<compile_context>
chip_gen: v6e
topology: v6e:2x2x1
jax: 0.10.0
libtpu: 0.0.40
codegen_flags: <defaults>
</compile_context>

<pallas_src>
import functools

import jax
import jax.numpy as jnp
import numpy as np
from jax.experimental import pallas as pl
from jax.experimental.pallas import tpu as pltpu


# ---------------------------------------------------------------------------
# Fused per-(batch, layer) kernel body
# ---------------------------------------------------------------------------
def _layernorm_f32(x, w, b, eps):
    mu = jnp.mean(x, axis=-1, keepdims=True)
    c = x - mu
    var = jnp.mean(c * c, axis=-1, keepdims=True)
    return c * jax.lax.rsqrt(var + eps) * w + b


def _shared_block_kernel(x_ref, mask_ref,
                         ln1w_ref, ln1b_ref,
                         wk_ref, bk_ref, wv_ref, bv_ref,
                         qs_ref,
                         wo_ref, bo_ref,
                         ln2w_ref, ln2b_ref,
                         wfc_ref, bfc_ref,
                         wpj_ref, bpj_ref,
                         out_ref, xs_ref,
                         *, n_head, eps):
    layer = pl.program_id(1)

    # Layer 0: pull the residual stream for this batch element into the VMEM
    # scratch carrier; it stays resident across the whole layer loop.
    @pl.when(layer == 0)
    def _():
        xs_ref[...] = x_ref[0].astype(jnp.float32)

    x = xs_ref[...]                                        # (S, D) f32

    # ---- x = x + MHA(shared_q, ln_1(x), ln_1(x), attn_mask) ----------------
    y = _layernorm_f32(x, ln1w_ref[0], ln1b_ref[0], eps)   # ln_1 (f32 like LayerNorm.forward)

    k = jnp.dot(y, wk_ref[0], preferred_element_type=jnp.float32) + bk_ref[0]   # (S, D)
    v = jnp.dot(y, wv_ref[0], preferred_element_type=jnp.float32) + bv_ref[0]   # (S, D)
    q = qs_ref[0]                                          # (L, D) pre-projected & pre-scaled
    mask = mask_ref[0].astype(jnp.float32)                 # (L, S) additive float mask

    d_model = x.shape[-1]
    hd = d_model // n_head
    contract_last = (((1,), (1,)), ((), ()))               # q @ k^T without explicit .T

    head_outs = []
    for h in range(n_head):                                # static unroll, n_head is small
        lo, hi = h * hd, (h + 1) * hd
        qh = q[:, lo:hi]                                   # (L, hd)
        kh = k[:, lo:hi]                                   # (S, hd)
        vh = v[:, lo:hi]                                   # (S, hd)
        s = jax.lax.dot_general(qh, kh, contract_last,
                                preferred_element_type=jnp.float32) + mask      # (L, S)
        m = jnp.max(s, axis=-1, keepdims=True)
        e = jnp.exp(s - m)
        p = e / jnp.sum(e, axis=-1, keepdims=True)         # softmax over keys
        head_outs.append(jnp.dot(p, vh, preferred_element_type=jnp.float32))    # (L, hd)

    attn = jnp.concatenate(head_outs, axis=-1)             # (L, D)
    attn = jnp.dot(attn, wo_ref[0], preferred_element_type=jnp.float32) + bo_ref[0]

    x = x + attn                                           # residual (S == L == 4)

    # ---- x = x + c_proj(QuickGELU(c_fc(ln_2(x)))) ---------------------------
    z = _layernorm_f32(x, ln2w_ref[0], ln2b_ref[0], eps)
    h1 = jnp.dot(z, wfc_ref[0], preferred_element_type=jnp.float32) + bfc_ref[0]  # (S, 4D)
    g = h1 * jax.nn.sigmoid(1.702 * h1)                    # QuickGELU
    x = x + jnp.dot(g, wpj_ref[0], preferred_element_type=jnp.float32) + bpj_ref[0]

    xs_ref[...] = x
    out_ref[0] = x.astype(out_ref.dtype)


# ---------------------------------------------------------------------------
# Wrapper: one pallas_call for the whole stack of residual blocks
# ---------------------------------------------------------------------------
def shared_transformer_clip_forward(packed, x, attn_mask, *, n_head, eps=1e-5):
    """x: (S, B, D) seq-first (like PyTorch); attn_mask: (B, Lq, S) additive float.

    Returns (S, B, D) float32.
    """
    S, B, D = x.shape
    n_layers, Lq, _ = packed["q_scaled"].shape
    assert S == Lq, "residual add requires seq_len == shared_q rows (4)"

    xb = jnp.transpose(x, (1, 0, 2)).astype(jnp.float32)   # (B, S, D), D on lanes
    mask = attn_mask.astype(jnp.float32)                   # (B, Lq, S)

    def layer_spec(name):
        shp = packed[name].shape                            # (n_layers, r, c)
        return pl.BlockSpec((1,) + shp[1:], lambda b, l: (l, 0, 0))

    param_order = ["ln1_w", "ln1_b", "WkT", "bk", "WvT", "bv", "q_scaled",
                   "WoT", "bo", "ln2_w", "ln2_b", "WfcT", "bfc", "WpjT", "bpj"]

    grid_spec = pltpu.PrefetchScalarGridSpec(
        num_scalar_prefetch=0,
        grid=(B, n_layers),                                  # batch outer, layer inner
        in_specs=[pl.BlockSpec((1, S, D), lambda b, l: (b, 0, 0)),     # x (layer-invariant)
                  pl.BlockSpec((1, Lq, S), lambda b, l: (b, 0, 0))]    # attn_mask
                 + [layer_spec(n) for n in param_order],
        out_specs=pl.BlockSpec((1, S, D), lambda b, l: (b, 0, 0)),      # revisited across layers
        scratch_shapes=[pltpu.VMEM((S, D), jnp.float32)],               # residual-stream carrier
    )

    kernel = functools.partial(_shared_block_kernel, n_head=n_head, eps=eps)

    out = pl.pallas_call(
        kernel,
        out_shape=jax.ShapeDtypeStruct((B, S, D), jnp.float32),
        grid_spec=grid_spec,
        compiler_params=pltpu.CompilerParams(
            dimension_semantics=("parallel", "arbitrary")),
    )(xb, mask, *[packed[n] for n in param_order])

    return jnp.transpose(out, (1, 0, 2))                    # back to (S, B, D)


# ---------------------------------------------------------------------------
# Parameter construction (PyTorch-style) and kernel-side packing
# ---------------------------------------------------------------------------
def init_shared_transformer_params(key, *, width, layers):
    """Per-layer parameter dicts mimicking the PyTorch module's init."""
    D = width
    layer_keys = jax.random.split(key, layers)
    params = []
    for lk in layer_keys:
        ks = jax.random.split(lk, 6)
        xav = float(np.sqrt(6.0 / (3 * D + D)))              # xavier_uniform for in_proj_weight
        in_proj_w = jax.random.uniform(ks[0], (3 * D, D), jnp.float32, -xav, xav)
        bnd = float(1.0 / np.sqrt(D))
        bnd4 = float(1.0 / np.sqrt(4 * D))
        params.append({
            "ln1_w": jnp.ones((D,), jnp.float32),
            "ln1_b": jnp.zeros((D,), jnp.float32),
            "ln2_w": jnp.ones((D,), jnp.float32),
            "ln2_b": jnp.zeros((D,), jnp.float32),
            "shared_q": jnp.ones((4, D), jnp.float32),       # nn.Parameter(torch.ones(4, d_model))
            "Wq": in_proj_w[:D], "Wk": in_proj_w[D:2 * D], "Wv": in_proj_w[2 * D:],
            "bq": jnp.zeros((D,), jnp.float32),
            "bk": jnp.zeros((D,), jnp.float32),
            "bv": jnp.zeros((D,), jnp.float32),
            "Wo": jax.random.uniform(ks[1], (D, D), jnp.float32, -bnd, bnd),
            "bo": jnp.zeros((D,), jnp.float32),
            "Wfc": jax.random.uniform(ks[2], (4 * D, D), jnp.float32, -bnd, bnd),
            "bfc": jax.random.uniform(ks[3], (4 * D,), jnp.float32, -bnd, bnd),
            "Wpj": jax.random.uniform(ks[4], (D, 4 * D), jnp.float32, -bnd4, bnd4),
            "bpj": jax.random.uniform(ks[5], (D,), jnp.float32, -bnd4, bnd4),
        })
    return params


def pack_params(layer_params, *, n_head):
    """Stack per-layer params with a leading layer axis, pre-transpose linear
    weights, and precompute the (constant) projected + scaled shared query."""
    D = layer_params[0]["Wq"].shape[0]
    hd = D // n_head
    scale = 1.0 / float(np.sqrt(hd))

    def stack(fn):
        return jnp.stack([fn(p) for p in layer_params], axis=0)

    return {
        "ln1_w": stack(lambda p: p["ln1_w"].reshape(1, D)),
        "ln1_b": stack(lambda p: p["ln1_b"].reshape(1, D)),
        "WkT":   stack(lambda p: p["Wk"].T),
        "bk":    stack(lambda p: p["bk"].reshape(1, D)),
        "WvT":   stack(lambda p: p["Wv"].T),
        "bv":    stack(lambda p: p["bv"].reshape(1, D)),
        # shared_q and Wq/bq are all parameters -> the in-projected, head-scaled
        # query is a per-layer constant; hoist it out of the per-call path.
        "q_scaled": stack(lambda p: (p["shared_q"] @ p["Wq"].T + p["bq"]) * scale),
        "WoT":   stack(lambda p: p["Wo"].T),
        "bo":    stack(lambda p: p["bo"].reshape(1, D)),
        "ln2_w": stack(lambda p: p["ln2_w"].reshape(1, D)),
        "ln2_b": stack(lambda p: p["ln2_b"].reshape(1, D)),
        "WfcT":  stack(lambda p: p["Wfc"].T),
        "bfc":   stack(lambda p: p["bfc"].reshape(1, 4 * D)),
        "WpjT":  stack(lambda p: p["Wpj"].T),
        "bpj":   stack(lambda p: p["bpj"].reshape(1, D)),
    }


# ---------------------------------------------------------------------------
# Pure-JAX reference (mirrors PyTorch semantics) for a numerical sanity check
# ---------------------------------------------------------------------------
def _ref_layernorm(x, w, b, eps=1e-5):
    mu = x.mean(-1, keepdims=True)
    var = ((x - mu) ** 2).mean(-1, keepdims=True)
    return (x - mu) / jnp.sqrt(var + eps) * w + b


def _reference_block(p, x, attn_mask, n_head):
    S, B, D = x.shape
    hd = D // n_head
    Lq = p["shared_q"].shape[0]

    y = _ref_layernorm(x, p["ln1_w"], p["ln1_b"])
    q_in = jnp.broadcast_to(p["shared_q"][:, None, :], (Lq, B, D))
    q = q_in @ p["Wq"].T + p["bq"]
    k = y @ p["Wk"].T + p["bk"]
    v = y @ p["Wv"].T + p["bv"]

    def heads(t, L):
        return t.reshape(L, B, n_head, hd).transpose(1, 2, 0, 3)   # (B, H, L, hd)

    qh = heads(q, Lq) / np.sqrt(hd)
    kh = heads(k, S)
    vh = heads(v, S)
    scores = jnp.einsum("bhld,bhsd->bhls", qh, kh) + attn_mask[:, None, :, :]
    pa = jax.nn.softmax(scores, axis=-1)
    o = jnp.einsum("bhls,bhsd->bhld", pa, vh)
    o = o.transpose(2, 0, 1, 3).reshape(Lq, B, D)
    x = x + (o @ p["Wo"].T + p["bo"])

    z = _ref_layernorm(x, p["ln2_w"], p["ln2_b"])
    h1 = z @ p["Wfc"].T + p["bfc"]
    g = h1 * jax.nn.sigmoid(1.702 * h1)
    return x + (g @ p["Wpj"].T + p["bpj"])


def reference_forward(layer_params, x, attn_mask, n_head):
    for p in layer_params:
        x = _reference_block(p, x, attn_mask, n_head)
    return x


# ---------------------------------------------------------------------------
if __name__ == "__main__":
    WIDTH, LAYERS, HEADS = 128, 2, 4
    SEQ, BATCH = 4, 2            # seq length must equal shared_q rows (4)

    key = jax.random.PRNGKey(0)
    k_params, k_x = jax.random.split(key)

    layer_params = init_shared_transformer_params(k_params, width=WIDTH, layers=LAYERS)
    packed = pack_params(layer_params, n_head=HEADS)

    x = jax.random.normal(k_x, (SEQ, BATCH, WIDTH), jnp.float32)    # (S, B, D) seq-first
    causal = jnp.where(jnp.arange(SEQ)[:, None] >= jnp.arange(SEQ)[None, :],
                       0.0, -1e9).astype(jnp.float32)
    attn_mask = jnp.stack([causal, jnp.zeros((SEQ, SEQ), jnp.float32)], axis=0)  # (B, L, S)

    fwd = jax.jit(functools.partial(shared_transformer_clip_forward, n_head=HEADS))
    out = jax.block_until_ready(fwd(packed, x, attn_mask))
    assert out.shape == (SEQ, BATCH, WIDTH), out.shape

    ref = jax.block_until_ready(reference_forward(layer_params, x, attn_mask, HEADS))
    np.testing.assert_allclose(np.asarray(out), np.asarray(ref), rtol=2e-2, atol=2e-2)

    print("KERNEL_OK")
</pallas_src>

<mosaic_0001>
module attributes {stable_mosaic.version = 11 : i64} {
  func.func @_shared_block_kernel(%arg0: i32, %arg1: i32, %arg2: memref<1x4x128xf32, #tpu.memory_space<vmem>>, %arg3: memref<1x4x4xf32, #tpu.memory_space<vmem>>, %arg4: memref<1x1x128xf32, #tpu.memory_space<vmem>>, %arg5: memref<1x1x128xf32, #tpu.memory_space<vmem>>, %arg6: memref<1x128x128xf32, #tpu.memory_space<vmem>>, %arg7: memref<1x1x128xf32, #tpu.memory_space<vmem>>, %arg8: memref<1x128x128xf32, #tpu.memory_space<vmem>>, %arg9: memref<1x1x128xf32, #tpu.memory_space<vmem>>, %arg10: memref<1x4x128xf32, #tpu.memory_space<vmem>>, %arg11: memref<1x128x128xf32, #tpu.memory_space<vmem>>, %arg12: memref<1x1x128xf32, #tpu.memory_space<vmem>>, %arg13: memref<1x1x128xf32, #tpu.memory_space<vmem>>, %arg14: memref<1x1x128xf32, #tpu.memory_space<vmem>>, %arg15: memref<1x128x512xf32, #tpu.memory_space<vmem>>, %arg16: memref<1x1x512xf32, #tpu.memory_space<vmem>>, %arg17: memref<1x512x128xf32, #tpu.memory_space<vmem>>, %arg18: memref<1x1x128xf32, #tpu.memory_space<vmem>>, %arg19: memref<1x4x128xf32, #tpu.memory_space<vmem>>, %arg20: memref<4x128xf32, #tpu.memory_space<vmem>>) attributes {dimension_semantics = [#tpu.dimension_semantics<parallel>, #tpu.dimension_semantics<arbitrary>], iteration_bounds = array<i64: 2, 2>, scalar_prefetch = 0 : i64, scratch_operands = 1 : i64, tpu.core_type = #tpu.core_type<tc>, window_params = [{transform_indices = @transform_0, window_bounds = array<i64: 1, 4, 128>}, {transform_indices = @transform_1, window_bounds = array<i64: 1, 4, 4>}, {transform_indices = @transform_2, window_bounds = array<i64: 1, 1, 128>}, {transform_indices = @transform_3, window_bounds = array<i64: 1, 1, 128>}, {transform_indices = @transform_4, window_bounds = array<i64: 1, 128, 128>}, {transform_indices = @transform_5, window_bounds = array<i64: 1, 1, 128>}, {transform_indices = @transform_6, window_bounds = array<i64: 1, 128, 128>}, {transform_indices = @transform_7, window_bounds = array<i64: 1, 1, 128>}, {transform_indices = @transform_8, window_bounds = array<i64: 1, 4, 128>}, {transform_indices = @transform_9, window_bounds = array<i64: 1, 128, 128>}, {transform_indices = @transform_10, window_bounds = array<i64: 1, 1, 128>}, {transform_indices = @transform_11, window_bounds = array<i64: 1, 1, 128>}, {transform_indices = @transform_12, window_bounds = array<i64: 1, 1, 128>}, {transform_indices = @transform_13, window_bounds = array<i64: 1, 128, 512>}, {transform_indices = @transform_14, window_bounds = array<i64: 1, 1, 512>}, {transform_indices = @transform_15, window_bounds = array<i64: 1, 512, 128>}, {transform_indices = @transform_16, window_bounds = array<i64: 1, 1, 128>}, {transform_indices = @transform_17, window_bounds = array<i64: 1, 4, 128>}]} {
    %c0_i32 = arith.constant 0 : i32
    %0 = arith.cmpi eq, %arg1, %c0_i32 : i32
    %1 = arith.extui %0 : i1 to i32
    %c0_i32_0 = arith.constant 0 : i32
    %2 = arith.cmpi ne, %1, %c0_i32_0 : i32
    scf.if %2 {
      %c0_87 = arith.constant 0 : index
      %c0_88 = arith.constant 0 : index
      %c0_89 = arith.constant 0 : index
      %166 = vector.load %arg2[%c0_87, %c0_88, %c0_89] : memref<1x4x128xf32, #tpu.memory_space<vmem>>, vector<1x4x128xf32>
      %167 = vector.shape_cast %166 : vector<1x4x128xf32> to vector<4x128xf32>
      %c0_90 = arith.constant 0 : index
      %c0_91 = arith.constant 0 : index
      %168 = vector.load %arg20[%c0_90, %c0_91] : memref<4x128xf32, #tpu.memory_space<vmem>>, vector<4x128xf32>
      tpu.vector_store %arg20[%c0_90, %c0_91], %167 {strides = array<i32>} : memref<4x128xf32, #tpu.memory_space<vmem>>, vector<4x128xf32>,
    } else {
    }
    %c0 = arith.constant 0 : index
    %c0_1 = arith.constant 0 : index
    %3 = vector.load %arg20[%c0, %c0_1] : memref<4x128xf32, #tpu.memory_space<vmem>>, vector<4x128xf32>
    %c0_2 = arith.constant 0 : index
    %c0_3 = arith.constant 0 : index
    %c0_4 = arith.constant 0 : index
    %4 = vector.load %arg4[%c0_2, %c0_3, %c0_4] : memref<1x1x128xf32, #tpu.memory_space<vmem>>, vector<1x1x128xf32>
    %5 = vector.shape_cast %4 : vector<1x1x128xf32> to vector<1x128xf32>
    %c0_5 = arith.constant 0 : index
    %c0_6 = arith.constant 0 : index
    %c0_7 = arith.constant 0 : index
    %6 = vector.load %arg5[%c0_5, %c0_6, %c0_7] : memref<1x1x128xf32, #tpu.memory_space<vmem>>, vector<1x1x128xf32>
    %7 = vector.shape_cast %6 : vector<1x1x128xf32> to vector<1x128xf32>
    %cst = arith.constant dense<0.000000e+00> : vector<4xf32>
    %8 = vector.multi_reduction <add>, %3, %cst [1] : vector<4x128xf32> to vector<4xf32>
    %9 = vector.shape_cast %8 : vector<4xf32> to vector<4x1xf32>
    %cst_8 = arith.constant 1.280000e+02 : f32
    %10 = vector.broadcast %cst_8 : f32 to vector<4x1xf32>
    %11 = arith.divf %9, %10 : vector<4x1xf32>
    %12 = vector.broadcast %11 : vector<4x1xf32> to vector<4x128xf32>
    %13 = arith.subf %3, %12 : vector<4x128xf32>
    %14 = arith.mulf %13, %13 : vector<4x128xf32>
    %cst_9 = arith.constant dense<0.000000e+00> : vector<4xf32>
    %15 = vector.multi_reduction <add>, %14, %cst_9 [1] : vector<4x128xf32> to vector<4xf32>
    %16 = vector.shape_cast %15 : vector<4xf32> to vector<4x1xf32>
    %cst_10 = arith.constant 1.280000e+02 : f32
    %17 = vector.broadcast %cst_10 : f32 to vector<4x1xf32>
    %18 = arith.divf %16, %17 : vector<4x1xf32>
    %cst_11 = arith.constant 9.99999974E-6 : f32
    %19 = vector.broadcast %cst_11 : f32 to vector<4x1xf32>
    %20 = arith.addf %18, %19 : vector<4x1xf32>
    %21 = math.rsqrt %20 : vector<4x1xf32>
    %22 = vector.broadcast %21 : vector<4x1xf32> to vector<4x128xf32>
    %23 = arith.mulf %13, %22 : vector<4x128xf32>
    %24 = vector.broadcast %5 : vector<1x128xf32> to vector<4x128xf32>
    %25 = arith.mulf %23, %24 : vector<4x128xf32>
    %26 = vector.broadcast %7 : vector<1x128xf32> to vector<4x128xf32>
    %27 = arith.addf %25, %26 : vector<4x128xf32>
    %c0_12 = arith.constant 0 : index
    %c0_13 = arith.constant 0 : index
    %c0_14 = arith.constant 0 : index
    %28 = vector.load %arg6[%c0_12, %c0_13, %c0_14] : memref<1x128x128xf32, #tpu.memory_space<vmem>>, vector<1x128x128xf32>
    %29 = vector.shape_cast %28 : vector<1x128x128xf32> to vector<128x128xf32>
    %cst_15 = arith.constant dense<0.000000e+00> : vector<4x128xf32>
    %30 = tpu.matmul %27, %29, %cst_15 {dimension_numbers = #tpu.dot_dimension_numbers<[1], [0], [0], [1], [0, 0, 1, 1], [], []>} : vector<4x128xf32>, vector<128x128xf32>, vector<4x128xf32> -> vector<4x128xf32>
    %c0_16 = arith.constant 0 : index
    %c0_17 = arith.constant 0 : index
    %c0_18 = arith.constant 0 : index
    %31 = vector.load %arg7[%c0_16, %c0_17, %c0_18] : memref<1x1x128xf32, #tpu.memory_space<vmem>>, vector<1x1x128xf32>
    %32 = vector.shape_cast %31 : vector<1x1x128xf32> to vector<1x128xf32>
    %33 = vector.broadcast %32 : vector<1x128xf32> to vector<4x128xf32>
    %34 = arith.addf %30, %33 : vector<4x128xf32>
    %c0_19 = arith.constant 0 : index
    %c0_20 = arith.constant 0 : index
    %c0_21 = arith.constant 0 : index
    %35 = vector.load %arg8[%c0_19, %c0_20, %c0_21] : memref<1x128x128xf32, #tpu.memory_space<vmem>>, vector<1x128x128xf32>
    %36 = vector.shape_cast %35 : vector<1x128x128xf32> to vector<128x128xf32>
    %cst_22 = arith.constant dense<0.000000e+00> : vector<4x128xf32>
    %37 = tpu.matmul %27, %36, %cst_22 {dimension_numbers = #tpu.dot_dimension_numbers<[1], [0], [0], [1], [0, 0, 1, 1], [], []>} : vector<4x128xf32>, vector<128x128xf32>, vector<4x128xf32> -> vector<4x128xf32>
    %c0_23 = arith.constant 0 : index
    %c0_24 = arith.constant 0 : index
    %c0_25 = arith.constant 0 : index
    %38 = vector.load %arg9[%c0_23, %c0_24, %c0_25] : memref<1x1x128xf32, #tpu.memory_space<vmem>>, vector<1x1x128xf32>
    %39 = vector.shape_cast %38 : vector<1x1x128xf32> to vector<1x128xf32>
    %40 = vector.broadcast %39 : vector<1x128xf32> to vector<4x128xf32>
    %41 = arith.addf %37, %40 : vector<4x128xf32>
    %c0_26 = arith.constant 0 : index
    %c0_27 = arith.constant 0 : index
    %c0_28 = arith.constant 0 : index
    %42 = vector.load %arg10[%c0_26, %c0_27, %c0_28] : memref<1x4x128xf32, #tpu.memory_space<vmem>>, vector<1x4x128xf32>
    %43 = vector.shape_cast %42 : vector<1x4x128xf32> to vector<4x128xf32>
    %c0_29 = arith.constant 0 : index
    %c0_30 = arith.constant 0 : index
    %c0_31 = arith.constant 0 : index
    %44 = vector.load %arg3[%c0_29, %c0_30, %c0_31] : memref<1x4x4xf32, #tpu.memory_space<vmem>>, vector<1x4x4xf32>
    %45 = vector.shape_cast %44 : vector<1x4x4xf32> to vector<4x4xf32>
    %46 = vector.extract_strided_slice %43 {offsets = [0, 0], sizes = [4, 32], strides = [1, 1]} : vector<4x128xf32> to vector<4x32xf32>
    %47 = vector.extract_strided_slice %34 {offsets = [0, 0], sizes = [4, 32], strides = [1, 1]} : vector<4x128xf32> to vector<4x32xf32>
    %48 = vector.extract_strided_slice %41 {offsets = [0, 0], sizes = [4, 32], strides = [1, 1]} : vector<4x128xf32> to vector<4x32xf32>
    %cst_32 = arith.constant dense<0.000000e+00> : vector<4x4xf32>
    %49 = tpu.matmul %46, %47, %cst_32 {dimension_numbers = #tpu.dot_dimension_numbers<[1], [1], [0], [0], [0, 0, 1, 0], [], []>} : vector<4x32xf32>, vector<4x32xf32>, vector<4x4xf32> -> vector<4x4xf32>
    %50 = arith.addf %49, %45 : vector<4x4xf32>
    %cst_33 = arith.constant dense<0xFF800000> : vector<4xf32>
    %51 = vector.multi_reduction <maximumf>, %50, %cst_33 [1] : vector<4x4xf32> to vector<4xf32>
    %52 = vector.shape_cast %51 : vector<4xf32> to vector<4x1xf32>
    %53 = vector.broadcast %52 : vector<4x1xf32> to vector<4x4xf32>
    %54 = arith.subf %50, %53 : vector<4x4xf32>
    %55 = math.exp %54 : vector<4x4xf32>
    %cst_34 = arith.constant dense<0.000000e+00> : vector<4xf32>
    %56 = vector.multi_reduction <add>, %55, %cst_34 [1] : vector<4x4xf32> to vector<4xf32>
    %57 = vector.shape_cast %56 : vector<4xf32> to vector<4x1xf32>
    %58 = vector.broadcast %57 : vector<4x1xf32> to vector<4x4xf32>
    %59 = arith.divf %55, %58 : vector<4x4xf32>
    %cst_35 = arith.constant dense<0.000000e+00> : vector<4x32xf32>
    %60 = tpu.matmul %59, %48, %cst_35 {dimension_numbers = #tpu.dot_dimension_numbers<[1], [0], [0], [1], [0, 0, 1, 1], [], []>} : vector<4x4xf32>, vector<4x32xf32>, vector<4x32xf32> -> vector<4x32xf32>
    %61 = vector.extract_strided_slice %43 {offsets = [0, 32], sizes = [4, 32], strides = [1, 1]} : vector<4x128xf32> to vector<4x32xf32>
    %62 = vector.extract_strided_slice %34 {offsets = [0, 32], sizes = [4, 32], strides = [1, 1]} : vector<4x128xf32> to vector<4x32xf32>
    %63 = vector.extract_strided_slice %41 {offsets = [0, 32], sizes = [4, 32], strides = [1, 1]} : vector<4x128xf32> to vector<4x32xf32>
    %cst_36 = arith.constant dense<0.000000e+00> : vector<4x4xf32>
    %64 = tpu.matmul %61, %62, %cst_36 {dimension_numbers = #tpu.dot_dimension_numbers<[1], [1], [0], [0], [0, 0, 1, 0], [], []>} : vector<4x32xf32>, vector<4x32xf32>, vector<4x4xf32> -> vector<4x4xf32>
    %65 = arith.addf %64, %45 : vector<4x4xf32>
    %cst_37 = arith.constant dense<0xFF800000> : vector<4xf32>
    %66 = vector.multi_reduction <maximumf>, %65, %cst_37 [1] : vector<4x4xf32> to vector<4xf32>
    %67 = vector.shape_cast %66 : vector<4xf32> to vector<4x1xf32>
    %68 = vector.broadcast %67 : vector<4x1xf32> to vector<4x4xf32>
    %69 = arith.subf %65, %68 : vector<4x4xf32>
    %70 = math.exp %69 : vector<4x4xf32>
    %cst_38 = arith.constant dense<0.000000e+00> : vector<4xf32>
    %71 = vector.multi_reduction <add>, %70, %cst_38 [1] : vector<4x4xf32> to vector<4xf32>
    %72 = vector.shape_cast %71 : vector<4xf32> to vector<4x1xf32>
    %73 = vector.broadcast %72 : vector<4x1xf32> to vector<4x4xf32>
    %74 = arith.divf %70, %73 : vector<4x4xf32>
    %cst_39 = arith.constant dense<0.000000e+00> : vector<4x32xf32>
    %75 = tpu.matmul %74, %63, %cst_39 {dimension_numbers = #tpu.dot_dimension_numbers<[1], [0], [0], [1], [0, 0, 1, 1], [], []>} : vector<4x4xf32>, vector<4x32xf32>, vector<4x32xf32> -> vector<4x32xf32>
    %76 = vector.extract_strided_slice %43 {offsets = [0, 64], sizes = [4, 32], strides = [1, 1]} : vector<4x128xf32> to vector<4x32xf32>
    %77 = vector.extract_strided_slice %34 {offsets = [0, 64], sizes = [4, 32], strides = [1, 1]} : vector<4x128xf32> to vector<4x32xf32>
    %78 = vector.extract_strided_slice %41 {offsets = [0, 64], sizes = [4, 32], strides = [1, 1]} : vector<4x128xf32> to vector<4x32xf32>
    %cst_40 = arith.constant dense<0.000000e+00> : vector<4x4xf32>
    %79 = tpu.matmul %76, %77, %cst_40 {dimension_numbers = #tpu.dot_dimension_numbers<[1], [1], [0], [0], [0, 0, 1, 0], [], []>} : vector<4x32xf32>, vector<4x32xf32>, vector<4x4xf32> -> vector<4x4xf32>
    %80 = arith.addf %79, %45 : vector<4x4xf32>
    %cst_41 = arith.constant dense<0xFF800000> : vector<4xf32>
    %81 = vector.multi_reduction <maximumf>, %80, %cst_41 [1] : vector<4x4xf32> to vector<4xf32>
    %82 = vector.shape_cast %81 : vector<4xf32> to vector<4x1xf32>
    %83 = vector.broadcast %82 : vector<4x1xf32> to vector<4x4xf32>
    %84 = arith.subf %80, %83 : vector<4x4xf32>
    %85 = math.exp %84 : vector<4x4xf32>
    %cst_42 = arith.constant dense<0.000000e+00> : vector<4xf32>
    %86 = vector.multi_reduction <add>, %85, %cst_42 [1] : vector<4x4xf32> to vector<4xf32>
    %87 = vector.shape_cast %86 : vector<4xf32> to vector<4x1xf32>
    %88 = vector.broadcast %87 : vector<4x1xf32> to vector<4x4xf32>
    %89 = arith.divf %85, %88 : vector<4x4xf32>
    %cst_43 = arith.constant dense<0.000000e+00> : vector<4x32xf32>
    %90 = tpu.matmul %89, %78, %cst_43 {dimension_numbers = #tpu.dot_dimension_numbers<[1], [0], [0], [1], [0, 0, 1, 1], [], []>} : vector<4x4xf32>, vector<4x32xf32>, vector<4x32xf32> -> vector<4x32xf32>
    %91 = vector.extract_strided_slice %43 {offsets = [0, 96], sizes = [4, 32], strides = [1, 1]} : vector<4x128xf32> to vector<4x32xf32>
    %92 = vector.extract_strided_slice %34 {offsets = [0, 96], sizes = [4, 32], strides = [1, 1]} : vector<4x128xf32> to vector<4x32xf32>
    %93 = vector.extract_strided_slice %41 {offsets = [0, 96], sizes = [4, 32], strides = [1, 1]} : vector<4x128xf32> to vector<4x32xf32>
    %cst_44 = arith.constant dense<0.000000e+00> : vector<4x4xf32>
    %94 = tpu.matmul %91, %92, %cst_44 {dimension_numbers = #tpu.dot_dimension_numbers<[1], [1], [0], [0], [0, 0, 1, 0], [], []>} : vector<4x32xf32>, vector<4x32xf32>, vector<4x4xf32> -> vector<4x4xf32>
    %95 = arith.addf %94, %45 : vector<4x4xf32>
    %cst_45 = arith.constant dense<0xFF800000> : vector<4xf32>
    %96 = vector.multi_reduction <maximumf>, %95, %cst_45 [1] : vector<4x4xf32> to vector<4xf32>
    %97 = vector.shape_cast %96 : vector<4xf32> to vector<4x1xf32>
    %98 = vector.broadcast %97 : vector<4x1xf32> to vector<4x4xf32>
    %99 = arith.subf %95, %98 : vector<4x4xf32>
    %100 = math.exp %99 : vector<4x4xf32>
    %cst_46 = arith.constant dense<0.000000e+00> : vector<4xf32>
    %101 = vector.multi_reduction <add>, %100, %cst_46 [1] : vector<4x4xf32> to vector<4xf32>
    %102 = vector.shape_cast %101 : vector<4xf32> to vector<4x1xf32>
    %103 = vector.broadcast %102 : vector<4x1xf32> to vector<4x4xf32>
    %104 = arith.divf %100, %103 : vector<4x4xf32>
    %cst_47 = arith.constant dense<0.000000e+00> : vector<4x32xf32>
    %105 = tpu.matmul %104, %93, %cst_47 {dimension_numbers = #tpu.dot_dimension_numbers<[1], [0], [0], [1], [0, 0, 1, 1], [], []>} : vector<4x4xf32>, vector<4x32xf32>, vector<4x32xf32> -> vector<4x32xf32>
    %106 = tpu.concatenate %60, %75, %90, %105 in 1 : vector<4x32xf32>, vector<4x32xf32>, vector<4x32xf32>, vector<4x32xf32> -> vector<4x128xf32>
    %c0_48 = arith.constant 0 : index
    %c0_49 = arith.constant 0 : index
    %c0_50 = arith.constant 0 : index
    %107 = vector.load %arg11[%c0_48, %c0_49, %c0_50] : memref<1x128x128xf32, #tpu.memory_space<vmem>>, vector<1x128x128xf32>
    %108 = vector.shape_cast %107 : vector<1x128x128xf32> to vector<128x128xf32>
    %cst_51 = arith.constant dense<0.000000e+00> : vector<4x128xf32>
    %109 = tpu.matmul %106, %108, %cst_51 {dimension_numbers = #tpu.dot_dimension_numbers<[1], [0], [0], [1], [0, 0, 1, 1], [], []>} : vector<4x128xf32>, vector<128x128xf32>, vector<4x128xf32> -> vector<4x128xf32>
    %c0_52 = arith.constant 0 : index
    %c0_53 = arith.constant 0 : index
    %c0_54 = arith.constant 0 : index
    %110 = vector.load %arg12[%c0_52, %c0_53, %c0_54] : memref<1x1x128xf32, #tpu.memory_space<vmem>>, vector<1x1x128xf32>
    %111 = vector.shape_cast %110 : vector<1x1x128xf32> to vector<1x128xf32>
    %112 = vector.broadcast %111 : vector<1x128xf32> to vector<4x128xf32>
    %113 = arith.addf %109, %112 : vector<4x128xf32>
    %114 = arith.addf %3, %113 : vector<4x128xf32>
    %c0_55 = arith.constant 0 : index
    %c0_56 = arith.constant 0 : index
    %c0_57 = arith.constant 0 : index
    %115 = vector.load %arg13[%c0_55, %c0_56, %c0_57] : memref<1x1x128xf32, #tpu.memory_space<vmem>>, vector<1x1x128xf32>
    %116 = vector.shape_cast %115 : vector<1x1x128xf32> to vector<1x128xf32>
    %c0_58 = arith.constant 0 : index
    %c0_59 = arith.constant 0 : index
    %c0_60 = arith.constant 0 : index
    %117 = vector.load %arg14[%c0_58, %c0_59, %c0_60] : memref<1x1x128xf32, #tpu.memory_space<vmem>>, vector<1x1x128xf32>
    %118 = vector.shape_cast %117 : vector<1x1x128xf32> to vector<1x128xf32>
    %cst_61 = arith.constant dense<0.000000e+00> : vector<4xf32>
    %119 = vector.multi_reduction <add>, %114, %cst_61 [1] : vector<4x128xf32> to vector<4xf32>
    %120 = vector.shape_cast %119 : vector<4xf32> to vector<4x1xf32>
    %cst_62 = arith.constant 1.280000e+02 : f32
    %121 = vector.broadcast %cst_62 : f32 to vector<4x1xf32>
    %122 = arith.divf %120, %121 : vector<4x1xf32>
    %123 = vector.broadcast %122 : vector<4x1xf32> to vector<4x128xf32>
    %124 = arith.subf %114, %123 : vector<4x128xf32>
    %125 = arith.mulf %124, %124 : vector<4x128xf32>
    %cst_63 = arith.constant dense<0.000000e+00> : vector<4xf32>
    %126 = vector.multi_reduction <add>, %125, %cst_63 [1] : vector<4x128xf32> to vector<4xf32>
    %127 = vector.shape_cast %126 : vector<4xf32> to vector<4x1xf32>
    %cst_64 = arith.constant 1.280000e+02 : f32
    %128 = vector.broadcast %cst_64 : f32 to vector<4x1xf32>
    %129 = arith.divf %127, %128 : vector<4x1xf32>
    %cst_65 = arith.constant 9.99999974E-6 : f32
    %130 = vector.broadcast %cst_65 : f32 to vector<4x1xf32>
    %131 = arith.addf %129, %130 : vector<4x1xf32>
    %132 = math.rsqrt %131 : vector<4x1xf32>
    %133 = vector.broadcast %132 : vector<4x1xf32> to vector<4x128xf32>
    %134 = arith.mulf %124, %133 : vector<4x128xf32>
    %135 = vector.broadcast %116 : vector<1x128xf32> to vector<4x128xf32>
    %136 = arith.mulf %134, %135 : vector<4x128xf32>
    %137 = vector.broadcast %118 : vector<1x128xf32> to vector<4x128xf32>
    %138 = arith.addf %136, %137 : vector<4x128xf32>
    %c0_66 = arith.constant 0 : index
    %c0_67 = arith.constant 0 : index
    %c0_68 = arith.constant 0 : index
    %139 = vector.load %arg15[%c0_66, %c0_67, %c0_68] : memref<1x128x512xf32, #tpu.memory_space<vmem>>, vector<1x128x512xf32>
    %140 = vector.shape_cast %139 : vector<1x128x512xf32> to vector<128x512xf32>
    %cst_69 = arith.constant dense<0.000000e+00> : vector<4x512xf32>
    %141 = tpu.matmul %138, %140, %cst_69 {dimension_numbers = #tpu.dot_dimension_numbers<[1], [0], [0], [1], [0, 0, 1, 1], [], []>} : vector<4x128xf32>, vector<128x512xf32>, vector<4x512xf32> -> vector<4x512xf32>
    %c0_70 = arith.constant 0 : index
    %c0_71 = arith.constant 0 : index
    %c0_72 = arith.constant 0 : index
    %142 = vector.load %arg16[%c0_70, %c0_71, %c0_72] : memref<1x1x512xf32, #tpu.memory_space<vmem>>, vector<1x1x512xf32>
    %143 = vector.shape_cast %142 : vector<1x1x512xf32> to vector<1x512xf32>
    %144 = vector.broadcast %143 : vector<1x512xf32> to vector<4x512xf32>
    %145 = arith.addf %141, %144 : vector<4x512xf32>
    %cst_73 = arith.constant 1.702000e+00 : f32
    %146 = vector.broadcast %cst_73 : f32 to vector<4x512xf32>
    %147 = arith.mulf %146, %145 : vector<4x512xf32>
    %148 = arith.negf %147 : vector<4x512xf32>
    %149 = math.exp %148 : vector<4x512xf32>
    %cst_74 = arith.constant 1.000000e+00 : f32
    %150 = vector.broadcast %cst_74 : f32 to vector<4x512xf32>
    %151 = arith.addf %150, %149 : vector<4x512xf32>
    %152 = arith.divf %150, %151 : vector<4x512xf32>
    %153 = arith.mulf %145, %152 : vector<4x512xf32>
    %c0_75 = arith.constant 0 : index
    %c0_76 = arith.constant 0 : index
    %c0_77 = arith.constant 0 : index
    %154 = vector.load %arg17[%c0_75, %c0_76, %c0_77] : memref<1x512x128xf32, #tpu.memory_space<vmem>>, vector<1x512x128xf32>
    %155 = vector.shape_cast %154 : vector<1x512x128xf32> to vector<512x128xf32>
    %cst_78 = arith.constant dense<0.000000e+00> : vector<4x128xf32>
    %156 = tpu.matmul %153, %155, %cst_78 {dimension_numbers = #tpu.dot_dimension_numbers<[1], [0], [0], [1], [0, 0, 1, 1], [], []>} : vector<4x512xf32>, vector<512x128xf32>, vector<4x128xf32> -> vector<4x128xf32>
    %157 = arith.addf %114, %156 : vector<4x128xf32>
    %c0_79 = arith.constant 0 : index
    %c0_80 = arith.constant 0 : index
    %c0_81 = arith.constant 0 : index
    %158 = vector.load %arg18[%c0_79, %c0_80, %c0_81] : memref<1x1x128xf32, #tpu.memory_space<vmem>>, vector<1x1x128xf32>
    %159 = vector.shape_cast %158 : vector<1x1x128xf32> to vector<1x128xf32>
    %160 = vector.broadcast %159 : vector<1x128xf32> to vector<4x128xf32>
    %161 = arith.addf %157, %160 : vector<4x128xf32>
    %c0_82 = arith.constant 0 : index
    %c0_83 = arith.constant 0 : index
    %162 = vector.load %arg20[%c0_82, %c0_83] : memref<4x128xf32, #tpu.memory_space<vmem>>, vector<4x128xf32>
    tpu.vector_store %arg20[%c0_82, %c0_83], %161 {strides = array<i32>} : memref<4x128xf32, #tpu.memory_space<vmem>>, vector<4x128xf32>,
    %c0_84 = arith.constant 0 : index
    %c0_85 = arith.constant 0 : index
    %c0_86 = arith.constant 0 : index
    %163 = vector.load %arg19[%c0_84, %c0_85, %c0_86] : memref<1x4x128xf32, #tpu.memory_space<vmem>>, vector<1x4x128xf32>
    %164 = vector.shape_cast %163 : vector<1x4x128xf32> to vector<4x128xf32>
    %165 = vector.shape_cast %161 : vector<4x128xf32> to vector<1x4x128xf32>
    tpu.vector_store %arg19[%c0_84, %c0_85, %c0_86], %165 {strides = array<i32>} : memref<1x4x128xf32, #tpu.memory_space<vmem>>, vector<1x4x128xf32>,
    return
  }
  func.func @transform_0(%arg0: i32, %arg1: i32) -> (i32, i32, i32) {
    %c0_i32 = arith.constant 0 : i32
    %c0_i32_0 = arith.constant 0 : i32
    %c0_i32_1 = arith.constant 0 : i32
    return %arg0, %c0_i32, %c0_i32_0 : i32, i32, i32
  }
  func.func @transform_1(%arg0: i32, %arg1: i32) -> (i32, i32, i32) {
    %c0_i32 = arith.constant 0 : i32
    %c0_i32_0 = arith.constant 0 : i32
    %c0_i32_1 = arith.constant 0 : i32
    return %arg0, %c0_i32, %c0_i32_0 : i32, i32, i32
  }
  func.func @transform_2(%arg0: i32, %arg1: i32) -> (i32, i32, i32) {
    %c0_i32 = arith.constant 0 : i32
    %c0_i32_0 = arith.constant 0 : i32
    %c0_i32_1 = arith.constant 0 : i32
    return %arg1, %c0_i32, %c0_i32_0 : i32, i32, i32
  }
  func.func @transform_3(%arg0: i32, %arg1: i32) -> (i32, i32, i32) {
    %c0_i32 = arith.constant 0 : i32
    %c0_i32_0 = arith.constant 0 : i32
    %c0_i32_1 = arith.constant 0 : i32
    return %arg1, %c0_i32, %c0_i32_0 : i32, i32, i32
  }
  func.func @transform_4(%arg0: i32, %arg1: i32) -> (i32, i32, i32) {
    %c0_i32 = arith.constant 0 : i32
    %c0_i32_0 = arith.constant 0 : i32
    %c0_i32_1 = arith.constant 0 : i32
    return %arg1, %c0_i32, %c0_i32_0 : i32, i32, i32
  }
  func.func @transform_5(%arg0: i32, %arg1: i32) -> (i32, i32, i32) {
    %c0_i32 = arith.constant 0 : i32
    %c0_i32_0 = arith.constant 0 : i32
    %c0_i32_1 = arith.constant 0 : i32
    return %arg1, %c0_i32, %c0_i32_0 : i32, i32, i32
  }
  func.func @transform_6(%arg0: i32, %arg1: i32) -> (i32, i32, i32) {
    %c0_i32 = arith.constant 0 : i32
    %c0_i32_0 = arith.constant 0 : i32
    %c0_i32_1 = arith.constant 0 : i32
    return %arg1, %c0_i32, %c0_i32_0 : i32, i32, i32
  }
  func.func @transform_7(%arg0: i32, %arg1: i32) -> (i32, i32, i32) {
    %c0_i32 = arith.constant 0 : i32
    %c0_i32_0 = arith.constant 0 : i32
    %c0_i32_1 = arith.constant 0 : i32
    return %arg1, %c0_i32, %c0_i32_0 : i32, i32, i32
  }
  func.func @transform_8(%arg0: i32, %arg1: i32) -> (i32, i32, i32) {
    %c0_i32 = arith.constant 0 : i32
    %c0_i32_0 = arith.constant 0 : i32
    %c0_i32_1 = arith.constant 0 : i32
    return %arg1, %c0_i32, %c0_i32_0 : i32, i32, i32
  }
  func.func @transform_9(%arg0: i32, %arg1: i32) -> (i32, i32, i32) {
    %c0_i32 = arith.constant 0 : i32
    %c0_i32_0 = arith.constant 0 : i32
    %c0_i32_1 = arith.constant 0 : i32
    return %arg1, %c0_i32, %c0_i32_0 : i32, i32, i32
  }
  func.func @transform_10(%arg0: i32, %arg1: i32) -> (i32, i32, i32) {
    %c0_i32 = arith.constant 0 : i32
    %c0_i32_0 = arith.constant 0 : i32
    %c0_i32_1 = arith.constant 0 : i32
    return %arg1, %c0_i32, %c0_i32_0 : i32, i32, i32
  }
  func.func @transform_11(%arg0: i32, %arg1: i32) -> (i32, i32, i32) {
    %c0_i32 = arith.constant 0 : i32
    %c0_i32_0 = arith.constant 0 : i32
    %c0_i32_1 = arith.constant 0 : i32
    return %arg1, %c0_i32, %c0_i32_0 : i32, i32, i32
  }
  func.func @transform_12(%arg0: i32, %arg1: i32) -> (i32, i32, i32) {
    %c0_i32 = arith.constant 0 : i32
    %c0_i32_0 = arith.constant 0 : i32
    %c0_i32_1 = arith.constant 0 : i32
    return %arg1, %c0_i32, %c0_i32_0 : i32, i32, i32
  }
  func.func @transform_13(%arg0: i32, %arg1: i32) -> (i32, i32, i32) {
    %c0_i32 = arith.constant 0 : i32
    %c0_i32_0 = arith.constant 0 : i32
    %c0_i32_1 = arith.constant 0 : i32
    return %arg1, %c0_i32, %c0_i32_0 : i32, i32, i32
  }
  func.func @transform_14(%arg0: i32, %arg1: i32) -> (i32, i32, i32) {
    %c0_i32 = arith.constant 0 : i32
    %c0_i32_0 = arith.constant 0 : i32
    %c0_i32_1 = arith.constant 0 : i32
    return %arg1, %c0_i32, %c0_i32_0 : i32, i32, i32
  }
  func.func @transform_15(%arg0: i32, %arg1: i32) -> (i32, i32, i32) {
    %c0_i32 = arith.constant 0 : i32
    %c0_i32_0 = arith.constant 0 : i32
    %c0_i32_1 = arith.constant 0 : i32
    return %arg1, %c0_i32, %c0_i32_0 : i32, i32, i32
  }
  func.func @transform_16(%arg0: i32, %arg1: i32) -> (i32, i32, i32) {
    %c0_i32 = arith.constant 0 : i32
    %c0_i32_0 = arith.constant 0 : i32
    %c0_i32_1 = arith.constant 0 : i32
    return %arg1, %c0_i32, %c0_i32_0 : i32, i32, i32
  }
  func.func @transform_17(%arg0: i32, %arg1: i32) -> (i32, i32, i32) {
    %c0_i32 = arith.constant 0 : i32
    %c0_i32_0 = arith.constant 0 : i32
    %c0_i32_1 = arith.constant 0 : i32
    return %arg0, %c0_i32, %c0_i32_0 : i32, i32, i32
  }
}

</mosaic_0001>

<bundles_post_ra>
// kernel: shared_transformer_clip_forward.1
= control target key start
LH: loop header
LB: loop body
LE: loop exit
PB: predicated region body
PF: predicated region fallthrough
CT: control target
= control target key end

     0   :  { %s4641_s0 = inlined_call_operand.vmem [shape: f32[2,4,128], index: 0, kind: input, shape index: {}]   ;;  %s4642_s1 = inlined_call_operand.vmem [shape: f32[2,4,4], index: 1, kind: input, shape index: {}]   ;;  %s4643_s2 = inlined_call_operand.vmem [shape: f32[2,1,128], index: 2, kind: input, shape index: {}]   ;;  %s4644_s3 = inlined_call_operand.hbm [shape: f32[2,1,128], index: 3, kind: input, shape index: {}]   ;;  %s4645_s4 = inlined_call_operand.hbm [shape: f32[2,128,128], index: 4, kind: input, shape index: {}]   ;;  %s4646_s5 = inlined_call_operand.hbm [shape: f32[2,1,128], index: 5, kind: input, shape index: {}]   ;;  %s4647_s6 = inlined_call_operand.hbm [shape: f32[2,128,128], index: 6, kind: input, shape index: {}]   ;;  %s4648_s7 = inlined_call_operand.hbm [shape: f32[2,1,128], index: 7, kind: input, shape index: {}]   ;;  %s4649_s8 = inlined_call_operand.vmem [shape: f32[2,4,128], index: 8, kind: input, shape index: {}]   ;;  %s4650_s9 = inlined_call_operand.hbm [shape: f32[2,128,128], index: 9, kind: input, shape index: {}]   ;;  %s4651_s10 = inlined_call_operand.hbm [shape: f32[2,1,128], index: 10, kind: input, shape index: {}]   ;;  %s4652_s11 = inlined_call_operand.vmem [shape: f32[2,1,128], index: 11, kind: input, shape index: {}]   ;;  %s4653_s12 = inlined_call_operand.hbm [shape: f32[2,1,128], index: 12, kind: input, shape index: {}]   ;;  %s4654_s13 = inlined_call_operand.hbm [shape: f32[2,128,512], index: 13, kind: input, shape index: {}]   ;;  %s4655_s14 = inlined_call_operand.vmem [shape: f32[2,1,512], index: 14, kind: input, shape index: {}]   ;;  %s4656_s15 = inlined_call_operand.hbm [shape: f32[2,512,128], index: 15, kind: input, shape index: {}]   ;;  %s4657_s16 = inlined_call_operand.hbm [shape: f32[2,1,128], index: 16, kind: input, shape index: {}]   ;;  %s4658_s17 = inlined_call_operand.vmem [shape: f32[2,4,128], index: 17, kind: output, shape index: {}]  }
   0x1   :  { %4677 = sst [smem:[#allocation38_spill]] %s4641_s0 }
   0x2   :  { %4678 = sst [smem:[#allocation39_spill]] %s4642_s1 }
   0x3   :  { %4679 = sst [smem:[#allocation40_spill]] %s4643_s2 }
   0x4   :  { %4680 = sst [smem:[#allocation41_spill]] %s4644_s3 }
   0x5   :  { %4681 = sst [smem:[#allocation42_spill]] %s4645_s4 }
   0x6   :  { %4682 = sst [smem:[#allocation43_spill]] %s4646_s5 }
   0x7   :  { %4683 = sst [smem:[#allocation44_spill]] %s4647_s6 }
   0x8   :  { %4684 = sst [smem:[#allocation45_spill]] %s4648_s7 }
   0x9   :  { %4685 = sst [smem:[#allocation46_spill]] %s4649_s8 }
   0xa   :  { %4686 = sst [smem:[#allocation47_spill]] %s4650_s9 }
   0xb   :  { %4687 = sst [smem:[#allocation48_spill]] %s4651_s10 }
   0xc   :  { %4688 = sst [smem:[#allocation49_spill]] %s4652_s11 }
   0xd   :  { %4689 = sst [smem:[#allocation50_spill]] %s4653_s12 }
   0xe   :  { %4690 = sst [smem:[#allocation51_spill]] %s4654_s13 }
   0xf   :  { %4691 = sst [smem:[#allocation52_spill]] %s4655_s14 }
  0x10   :  { %4692 = sst [smem:[#allocation53_spill]] %s4656_s15 }
  0x11   :  { %4693 = sst [smem:[#allocation54_spill]] %s4657_s16 }
  0x12   :  { %4694 = sst [smem:[#allocation55_spill]] %s4658_s17 }
  0x13   :  { %22 = vsyncpa [#allocation4], 0 }
  0x14   :  { %24 = vsyncpa [#allocation4 + $0x1], 0 }
  0x15   :  { %25 = vsyncpa [#allocation6], 0 }
  0x16   :  { %27 = vsyncpa [#allocation6 + $0x1], 0 }
  0x17   :  { %28 = vsyncpa [#allocation9], 0 }
  0x18   :  { %30 = vsyncpa [#allocation9 + $0x1], 0 }
  0x19   :  { %31 = vsyncpa [#allocation12], 0 }
  0x1a   :  { %33 = vsyncpa [#allocation12 + $0x1], 0 }
  0x1b   :  { %34 = vsyncpa [#allocation15], 0 }
  0x1c   :  { %36 = vsyncpa [#allocation15 + $0x1], 0 }
  0x1d   :  { %37 = vsyncpa [#allocation18], 0 }
  0x1e   :  { %39 = vsyncpa [#allocation18 + $0x1], 0  ;;  %s3894_s24 = smov 0   ;;  %s3896_s25 = smov 0  }
  0x1f   :  { %s3898_s26 = smov 0   ;;  %s3900_s27 = smov 0  }
  0x20   :  { %s3902_s28 = smov 0   ;;  %s3904_s29 = smov 0  }
  0x21   :  { %s3906_s0 = smov 0   ;;  %s3908_s30 = smov 0  }
  0x22 LB: > { %4695 = sst [smem:[#allocation26_spill]] %s3758_s25  ;;  %s4661_s18 = sadd.s32 4294967295, %s3782_s30   ;;  %s3782_s30 = sphi %s3908_s30, %s45_s30   ;;  %s3778_s0 = sphi %s3906_s0, %s4758_s0   ;;  %s3774_s29 = sphi %s3904_s29, %s4757_s29   ;;  %s3770_s28 = sphi %s3902_s28, %s4756_s28   ;;  %s3766_s27 = sphi %s3900_s27, %s4755_s27   ;;  %s3762_s26 = sphi %s3898_s26, %s4754_s26   ;;  %s3758_s25 = sphi %s3896_s25, %s4753_s25   ;;  %s3754_s24 = sphi %s3894_s24, %s4752_s24  }
  0x23   : > { %4696 = sst [smem:[#allocation27_spill]] %s3762_s26  ;;  %s54_s19 = sadd.s32 1, %s3774_s29 }
  0x24   : > { %4697 = sst [smem:[#allocation28_spill]] %s3766_s27  ;;  %p55_p0 = scmp.ge.s32.totalorder %s54_s19, 2 }
  0x25   : > { %4698 = sst [smem:[#allocation29_spill]] %s3770_s28  ;;  %s57_s1 = sadd.s32 1, %s3778_s0 }
  0x26   : > { %4699 = sst [smem:[#allocation30_spill]] %s3774_s29  ;;  %s142_s20 = sadd.s32 1, %s3762_s26 }
  0x27   : > { %4700 = sst [smem:[#allocation31_spill]] %s3778_s0  ;;  %p149_p1 = scmp.ne.s32.totalorder %s3762_s26, %s3758_s25 }
  0x28   : > { %4701 = sst [smem:[#allocation32_spill]] %s3782_s30  ;;  %s4760_s19 = smov (%p55_p0, %s54_s19), 0 }
  0x29   : > { %4702 = sst [smem:[#allocation33_spill]] %s4760_s19  ;;  %s4762_s1 = smov (!%p55_p0, %s57_s1), %s3778_s0 }
  0x2a   : > { %s139_s21 = ssub.s32 %s3774_s29, %s4760_s19  ;;  %p150_p2 = scmp.eq.s32.totalorder %s3782_s30, 0 }
  0x2b   : > { %p59_p3 = scmp.ge.s32.totalorder %s4762_s1, 2  ;;  %p140_p4 = scmp.eq.s32.totalorder %s139_s21, 0 }
  0x2c   : > { %p151_p5 = por %p150_p2, %p149_p1  ;;  %p155_p6 = scmp.ne.s32.totalorder %s3758_s25, %s3754_s24 }
  0x2d   : > { %s4764_s1 = smov (%p59_p3, %s4762_s1), 0  ;;  %p156_p7 = scmp.eq.s32.totalorder %s4661_s18, 0 }
  0x2e   : > { %4703 = sst [smem:[#allocation34_spill]] %s4764_s1  ;;  %p3278_p8 = scmp.lt.s32.totalorder %s3782_s30, 4 }
  0x2f   : > { %s3948_s22 = scalar_select %p140_p4, %s3762_s26, %s142_s20  }
  0x30   : > { %s3954_s23 = sand.u32 1, %s3762_s26   ;;  %p3956_p9 = por %p156_p7, %p155_p6 }
  0x31   : > { %4704 = sst [smem:[#allocation35_spill]] %s3948_s22  ;;  %s3961_s19 = sand.u32 1, %s3782_s30  }
  0x32   : > { %s4705_s0 = scalar_select %p3956_p9, 1, 0 }
  0x33   : > { %p3963_p10 = pnand %p3278_p8, %p151_p5  ;;  %s3968_s24 = sshll.u32 %s3954_s23, 7 }
  0x34   : > { %4706 = sst [smem:[#allocation36_spill]] %s4705_s0  ;;  %s3971_s20 = sshll.u32 %s3774_s29, 11 }
  0x35   : > { %s4708_s4 = sld [smem:[#allocation42_spill]]  ;;  %s584_s26 = scalar_lea.vmem [#allocation5], %s3968_s24 }
  0x36   : > { %s591_s17 = sshll.u32 %s584_s26, 4  ;;  %p2893_p11 = scmp.ge.s32.totalorder %s3782_s30, 1  ;;  %s592_s17 = int_to_ptr.vmem [resolvable:$true] %s591_s17 }
  0x37   : > { %s4668_s14 = scalar_lea.sflag [#allocation6], %s3961_s19  ;;  %p3982_p12 = pneg %p3963_p10 }
  0x38   : > { %s3401_s8 = scalar_lea.vmem %s592_s17, 2048  ;;  %s3784_s2 = smov [#allocation5]  }
  0x39   : > { %p3402_p13 = scmp.ne.s32.totalorder %s592_s17, %s3401_s8  ;;  %s3406_s27 = sshll.u32 %s3784_s2, 4  ;;  %s3407_s27 = int_to_ptr.vmem [resolvable:$false] %s3406_s27 }
  0x3a   : > { %s3408_s18 = scalar_lea.vmem %s3407_s27, 4096  ;;  %p3409_p2 = scmp.lt.s32.totalorder %s592_s17, %s3407_s27 }
  0x3b   : > { %s590_s22 = scalar_lea.hbm %s4708_s4, %s3971_s20  ;;  %p3404_p0 = pnand %p3402_p13, %p3982_p12 }
  0x3c   : > { %p3410_p3 = scmp.lt.s32.totalorder %s3408_s18, %s3401_s8 }
  0x3d   : > { %p3405_p1 = pneg %p3404_p0 }
  0x3e   : > { %p3411_p4 = por %p3410_p3, %p3409_p2 }
  0x40   : > { %p3412_p5 = pnand %p3411_p4, %p3405_p1 }
  0x42   : > { %3415 = shalt.err (!%p3412_p5)
}
  0x43   : > { %s4673_s26 = smov 128   ;;  %s4674_s1 = smov 8  }
  0x44   : > { %3250 = dma.hbm_to_vmem [thread:$0]  (!%p3963_p10), %s590_s22, 2048, %s592_s17, %s4668_s14, %s4673_s26, %s4673_s26, %s4674_s1  }
  0x45   : > { %p788_p6 = scmp.lt.s32.totalorder %s3782_s30, 5  ;;  %s4710_s6 = sld [smem:[#allocation44_spill]] }
  0x46   : > { %s622_s4 = scalar_lea.vmem [#allocation8], %s3968_s24  ;;  %s4672_s0 = scalar_lea.sflag [#allocation9], %s3961_s19 }
  0x47   : > { %p4002_p7 = pnand %p2893_p11, %p788_p6  ;;  %s629_s28 = sshll.u32 %s622_s4, 4  ;;  %s630_s28 = int_to_ptr.vmem [resolvable:$true] %s629_s28 }
  0x48   : > { %s3429_s25 = scalar_lea.vmem %s630_s28, 2048  ;;  %s3787_s17 = smov [#allocation8]  }
  0x49   : > { %s4711_s18 = scalar_select %p4002_p7, 1, 0 }
  0x4a   : > { %p3430_p8 = scmp.ne.s32.totalorder %s630_s28, %s3429_s25  ;;  %s3434_s22 = sshll.u32 %s3787_s17, 4  ;;  %s3435_s22 = int_to_ptr.vmem [resolvable:$false] %s3434_s22 }
  0x4b   : > { %s628_s27 = scalar_lea.hbm %s4710_s6, %s3971_s20  ;;  %4712 = sst [smem:[#allocation37_spill]] %s4711_s18 }
  0x4c   : > { %p3432_p13 = pnand %p3430_p8, %p3982_p12  ;;  %s3436_s14 = scalar_lea.vmem %s3435_s22, 4096 }
  0x4d   : > { %p3437_p1 = scmp.lt.s32.totalorder %s630_s28, %s3435_s22  ;;  %p3438_p2 = scmp.lt.s32.totalorder %s3436_s14, %s3429_s25 }
  0x4e   : > { %p3433_p0 = pneg %p3432_p13 }
  0x4f   : > { %p3439_p3 = por %p3438_p2, %p3437_p1 }
  0x51   : > { %p3440_p11 = pnand %p3439_p3, %p3433_p0 }
  0x53   : > { %3443 = shalt.err (!%p3440_p11)
}
  0x54   : > { %3256 = dma.hbm_to_vmem [thread:$0]  (!%p3963_p10), %s628_s27, 2048, %s630_s28, %s4672_s0, %s4673_s26, %s4673_s26, %s4674_s1  }
  0x55   : > { %s4713_s9 = sld [smem:[#allocation47_spill]]  ;;  %s667_s25 = scalar_lea.vmem [#allocation11], %s3968_s24 }
  0x56   : > { %s674_s8 = sshll.u32 %s667_s25, 4  ;;  %s4023_s17 = sshll.u32 %s3774_s29, 4  ;;  %s675_s8 = int_to_ptr.vmem [resolvable:$true] %s674_s8 }
  0x57   : > { %s4671_s22 = scalar_lea.sflag [#allocation12], %s3961_s19  ;;  %s3457_s6 = scalar_lea.vmem %s675_s8, 2048 }
  0x58   : > { %p3458_p4 = scmp.ne.s32.totalorder %s675_s8, %s3457_s6  ;;  %s3788_s30 = smov [#allocation11]  }
  0x59   : > { %s3462_s18 = sshll.u32 %s3788_s30, 4  ;;  %s3463_s18 = int_to_ptr.vmem [resolvable:$false] %s3462_s18 }
  0x5a   : > { %p3460_p5 = pnand %p3458_p4, %p3982_p12  ;;  %s3464_s16 = scalar_lea.vmem %s3463_s18, 4096 }
  0x5b   : > { %s673_s14 = scalar_lea.hbm %s4713_s9, %s3971_s20  ;;  %p3465_p8 = scmp.lt.s32.totalorder %s675_s8, %s3463_s18 }
  0x5c   : > { %p3461_p6 = pneg %p3460_p5  ;;  %p3466_p13 = scmp.lt.s32.totalorder %s3464_s16, %s3457_s6 }
  0x5e   : > { %p3467_p0 = por %p3466_p13, %p3465_p8 }
  0x60   : > { %p3468_p1 = pnand %p3467_p0, %p3461_p6 }
  0x62   : > { %3471 = shalt.err (!%p3468_p1)
}
  0x63   : > { %3262 = dma.hbm_to_vmem [thread:$0]  (!%p3963_p10), %s673_s14, 2048, %s675_s8, %s4671_s22, %s4673_s26, %s4673_s26, %s4674_s1  }
  0x64   : > { %s4714_s12 = sld [smem:[#allocation50_spill]]  ;;  %s710_s16 = scalar_lea.vmem [#allocation14], %s3954_s23 }
  0x65   : > { %s717_s24 = sshll.u32 %s710_s16, 4  ;;  %s2886_s20 = sshll.u32 %s3954_s23, 9  ;;  %s718_s24 = int_to_ptr.vmem [resolvable:$true] %s717_s24 }
  0x66   : > { %s4675_s27 = scalar_lea.sflag [#allocation15], %s3961_s19  ;;  %s3485_s18 = scalar_lea.vmem %s718_s24, 16 }
  0x67   : > { %p3486_p2 = scmp.ne.s32.totalorder %s718_s24, %s3485_s18  ;;  %s3789_s4 = smov [#allocation14]  }
  0x68   : > { %s3490_s2 = sshll.u32 %s3789_s4, 4  ;;  %s3491_s2 = int_to_ptr.vmem [resolvable:$false] %s3490_s2 }
  0x69   : > { %p3488_p3 = pnand %p3486_p2, %p3982_p12  ;;  %s3492_s25 = scalar_lea.vmem %s3491_s2, 32 }
  0x6a   : > { %s715_s6 = scalar_lea.hbm %s4714_s12, %s4023_s17  ;;  %p3493_p4 = scmp.lt.s32.totalorder %s718_s24, %s3491_s2 }
  0x6b   : > { %p3489_p11 = pneg %p3488_p3  ;;  %p3494_p5 = scmp.lt.s32.totalorder %s3492_s25, %s3485_s18 }
  0x6d   : > { %p3495_p6 = por %p3494_p5, %p3493_p4 }
  0x6f   : > { %p3496_p8 = pnand %p3495_p6, %p3489_p11 }
  0x71   : > { %3499 = shalt.err (!%p3496_p8)
}
  0x72   : > { %3268 = dma.hbm_to_vmem [thread:$0]  (!%p3963_p10), %s715_s6, 16, %s718_s24, %s4675_s27  }
  0x73   : > { %s2938_s14 = sshll.u32 %s3774_s29, 13  ;;  %s728_s8 = scalar_lea.vmem [#allocation16], %s2886_s20 }
  0x74   : > { %s735_s28 = sshll.u32 %s728_s8, 4  ;;  %s4715_s13 = sld [smem:[#allocation51_spill]]  ;;  %s4054_s28 = int_to_ptr.vmem [resolvable:$true] %s735_s28 }
  0x75   : > { %s4716_s15 = sld [smem:[#allocation53_spill]]  ;;  %s756_s22 = scalar_lea.vmem [#allocation17], %s2886_s20 }
  0x76   : > { %s763_s0 = sshll.u32 %s756_s22, 4  ;;  %s753_s26 = scalar_lea.sflag [#allocation18], %s3961_s19  ;;  %s764_s0 = int_to_ptr.vmem [resolvable:$true] %s763_s0 }
  0x77   : > { %s3513_s1 = scalar_lea.vmem %s764_s0, 8192  ;;  %s3790_s6 = smov [#allocation17]  }
  0x78   : > { %p3514_p13 = scmp.ne.s32.totalorder %s764_s0, %s3513_s1  ;;  %s3518_s24 = sshll.u32 %s3790_s6, 4  ;;  %s3519_s24 = int_to_ptr.vmem [resolvable:$false] %s3518_s24 }
  0x79   : > { %s3520_s8 = scalar_lea.vmem %s3519_s24, 16384  ;;  %p3521_p2 = scmp.lt.s32.totalorder %s764_s0, %s3519_s24 }
  0x7a   : > { %s4052_s4 = scalar_lea.hbm %s4715_s13, %s2938_s14  ;;  %p3516_p0 = pnand %p3514_p13, %p3982_p12 }
  0x7b   : > { %s762_s25 = scalar_lea.hbm %s4716_s15, %s2938_s14  ;;  %p3522_p3 = scmp.lt.s32.totalorder %s3520_s8, %s3513_s1 }
  0x7c   : > { %p3517_p1 = pneg %p3516_p0 }
  0x7d   : > { %p3523_p11 = por %p3522_p3, %p3521_p2 }
  0x7f   : > { %p3524_p4 = pnand %p3523_p11, %p3517_p1 }
  0x81   : > { %3527 = shalt.err (!%p3524_p4)
}
  0x82   : > { %s4717_s20 = smov 8   ;;  %s4718_s22 = smov 128  }
  0x83   : > { %3274 = dma.hbm_to_vmem [thread:$0]  (!%p3963_p10), %s762_s25, 8192, %s764_s0, %s753_s26, %s4718_s22, %s4718_s22, %s4717_s20  }
  0x84   : > { %s4719_s3 = sld [smem:[#allocation41_spill]]  ;;  %s566_s16 = scalar_lea.vmem [#allocation3], %s3954_s23 }
  0x85   : > { %s573_s18 = sshll.u32 %s566_s16, 4  ;;  %s4720_s5 = sld [smem:[#allocation43_spill]]  ;;  %s574_s18 = int_to_ptr.vmem [resolvable:$true] %s573_s18 }
  0x86   : > { %s564_s8 = scalar_lea.sflag [#allocation4], %s3954_s23  ;;  %s3541_s27 = scalar_lea.vmem %s574_s18, 16 }
  0x87   : > { %p3542_p5 = scmp.ne.s32.totalorder %s574_s18, %s3541_s27  ;;  %s3791_s9 = smov [#allocation3]  }
  0x88   : > { %s3546_s12 = sshll.u32 %s3791_s9, 4  ;;  %s3547_s12 = int_to_ptr.vmem [resolvable:$false] %s3546_s12 }
  0x89   : > { %p3544_p6 = pnand %p3542_p5, %p3982_p12  ;;  %s3548_s0 = scalar_lea.vmem %s3547_s12, 32 }
  0x8a   : > { %s571_s1 = scalar_lea.hbm %s4719_s3, %s4023_s17  ;;  %p3549_p13 = scmp.lt.s32.totalorder %s574_s18, %s3547_s12 }
  0x8b   : > { %s609_s24 = scalar_lea.hbm %s4720_s5, %s4023_s17  ;;  %p3545_p8 = pneg %p3544_p6 }
  0x8c   : > { %p3550_p0 = scmp.lt.s32.totalorder %s3548_s0, %s3541_s27 }
  0x8e   : > { %p3551_p1 = por %p3550_p0, %p3549_p13 }
  0x90   : > { %p3552_p2 = pnand %p3551_p1, %p3545_p8 }
  0x92   : > { %3555 = shalt.err (!%p3552_p2)
}
  0x93   : > { %3247 = dma.hbm_to_vmem [thread:$0]  (!%p3963_p10), %s571_s1, 16, %s574_s18, %s564_s8  }
  0x94   : > { %s604_s25 = scalar_lea.vmem [#allocation7], %s3954_s23  ;;  %s4721_s7 = sld [smem:[#allocation45_spill]] }
  0x95   : > { %s611_s20 = sshll.u32 %s604_s25, 4  ;;  %s3792_s12 = smov [#allocation7]   ;;  %s612_s20 = int_to_ptr.vmem [resolvable:$true] %s611_s20 }
  0x96   : > { %s3569_s30 = scalar_lea.vmem %s612_s20, 16  ;;  %s3574_s27 = sshll.u32 %s3792_s12, 4  ;;  %s3575_s27 = int_to_ptr.vmem [resolvable:$false] %s3574_s27 }
  0x97   : > { %p3570_p3 = scmp.ne.s32.totalorder %s612_s20, %s3569_s30  ;;  %s3576_s16 = scalar_lea.vmem %s3575_s27, 32 }
  0x98   : > { %p3577_p5 = scmp.lt.s32.totalorder %s612_s20, %s3575_s27  ;;  %p3578_p6 = scmp.lt.s32.totalorder %s3576_s16, %s3569_s30 }
  0x99   : > { %p3572_p11 = pnand %p3570_p3, %p3982_p12 }
  0x9a   : > { %s647_s9 = scalar_lea.hbm %s4721_s7, %s4023_s17  ;;  %p3579_p8 = por %p3578_p6, %p3577_p5 }
  0x9b   : > { %p3573_p4 = pneg %p3572_p11 }
  0x9d   : > { %p3580_p13 = pnand %p3579_p8, %p3573_p4 }
  0x9f   : > { %3583 = shalt.err (!%p3580_p13)
}
  0xa0   : > { %s4722_s1 = scalar_lea.sflag [#allocation6], %s3961_s19  ;;  %s642_s6 = scalar_lea.vmem [#allocation10], %s3954_s23 }
  0xa1   : > { %3253 = dma.hbm_to_vmem [thread:$0]  (!%p3963_p10), %s609_s24, 16, %s612_s20, %s4722_s1  }
  0xa2   : > { %s649_s8 = sshll.u32 %s642_s6, 4  ;;  %s4723_s10 = sld [smem:[#allocation48_spill]]  ;;  %s650_s8 = int_to_ptr.vmem [resolvable:$true] %s649_s8 }
  0xa3   : > { %s3597_s14 = scalar_lea.vmem %s650_s8, 16  ;;  %s3793_s30 = smov [#allocation10]  }
  0xa4   : > { %p3598_p0 = scmp.ne.s32.totalorder %s650_s8, %s3597_s14  ;;  %s3602_s12 = sshll.u32 %s3793_s30, 4  ;;  %s3603_s12 = int_to_ptr.vmem [resolvable:$false] %s3602_s12 }
  0xa5   : > { %s3604_s27 = scalar_lea.vmem %s3603_s12, 32  ;;  %p3605_p3 = scmp.lt.s32.totalorder %s650_s8, %s3603_s12 }
  0xa6   : > { %p3600_p1 = pnand %p3598_p0, %p3982_p12  ;;  %p3606_p11 = scmp.lt.s32.totalorder %s3604_s27, %s3597_s14 }
  0xa8   : > { %s692_s22 = scalar_lea.hbm %s4723_s10, %s4023_s17  ;;  %p3601_p2 = pneg %p3600_p1 }
  0xa9   : > { %p3607_p4 = por %p3606_p11, %p3605_p3 }
  0xab   : > { %p3608_p5 = pnand %p3607_p4, %p3601_p2 }
  0xad   : > { %3611 = shalt.err (!%p3608_p5)
}
  0xae   : > { %s4724_s24 = scalar_lea.sflag [#allocation9], %s3961_s19  ;;  %s687_s1 = scalar_lea.vmem [#allocation13], %s3954_s23 }
  0xaf   : > { %3259 = dma.hbm_to_vmem [thread:$0]  (!%p3963_p10), %s647_s9, 16, %s650_s8, %s4724_s24  }
  0xb0   : > { %s694_s18 = sshll.u32 %s687_s1, 4  ;;  %s3794_s6 = smov [#allocation13]   ;;  %s695_s18 = int_to_ptr.vmem [resolvable:$true] %s694_s18 }
  0xb1   : > { %s3625_s2 = scalar_lea.vmem %s695_s18, 16  ;;  %s3630_s0 = sshll.u32 %s3794_s6, 4  ;;  %s3631_s0 = int_to_ptr.vmem [resolvable:$false] %s3630_s0 }
  0xb2   : > { %p3626_p6 = scmp.ne.s32.totalorder %s695_s18, %s3625_s2  ;;  %s3632_s25 = scalar_lea.vmem %s3631_s0, 32 }
  0xb3   : > { %p3633_p0 = scmp.lt.s32.totalorder %s695_s18, %s3631_s0  ;;  %p3634_p1 = scmp.lt.s32.totalorder %s3632_s25, %s3625_s2 }
  0xb4   : > { %p3628_p8 = pnand %p3626_p6, %p3982_p12 }
  0xb5   : > { %p3635_p2 = por %p3634_p1, %p3633_p0 }
  0xb6   : > { %p3629_p13 = pneg %p3628_p8 }
  0xb8   : > { %p3636_p3 = pnand %p3635_p2, %p3629_p13 }
  0xba   : > { %3639 = shalt.err (!%p3636_p3)
}
  0xbb   : > { %s4725_s9 = scalar_lea.sflag [#allocation12], %s3961_s19  ;;  %s3653_s30 = scalar_lea.vmem %s4054_s28, 8192 }
  0xbc   : > { %3265 = dma.hbm_to_vmem [thread:$0]  (!%p3963_p10), %s692_s22, 16, %s695_s18, %s4725_s9  }
  0xbd   : > { %p3654_p11 = scmp.ne.s32.totalorder %s4054_s28, %s3653_s30  ;;  %s3795_s12 = smov [#allocation16]  }
  0xbe   : > { %s3658_s27 = sshll.u32 %s3795_s12, 4  ;;  %s3659_s27 = int_to_ptr.vmem [resolvable:$false] %s3658_s27 }
  0xbf   : > { %p3656_p4 = pnand %p3654_p11, %p3982_p12  ;;  %s3660_s24 = scalar_lea.vmem %s3659_s27, 16384 }
  0xc0   : > { %p3661_p6 = scmp.lt.s32.totalorder %s4054_s28, %s3659_s27  ;;  %p3662_p8 = scmp.lt.s32.totalorder %s3660_s24, %s3653_s30 }
  0xc1   : > { %p3657_p5 = pneg %p3656_p4 }
  0xc2   : > { %p3663_p13 = por %p3662_p8, %p3661_p6 }
  0xc4   : > { %p3664_p0 = pnand %p3663_p13, %p3657_p5 }
  0xc6   : > { %3667 = shalt.err (!%p3664_p0)
}
  0xc7   : > { %s3796_s20 = smov 512   ;;  %s3797_s22 = smov 32  }
  0xc8   : > { %s4726_s16 = scalar_lea.sflag [#allocation15], %s3961_s19  ;;  %s4727_s2 = sld [smem:[#allocation54_spill]] }
  0xc9   : > { %3271 = dma.hbm_to_vmem [thread:$0]  (!%p3963_p10), %s4052_s4, 8192, %s4054_s28, %s4726_s16, %s3796_s20, %s3796_s20, %s3797_s22  }
  0xca   : > { %s776_s0 = scalar_lea.vmem [#allocation19], %s3954_s23  ;;  %s3798_s8 = smov [#allocation19]  }
  0xcb   : > { %s783_s25 = sshll.u32 %s776_s0, 4  ;;  %s3686_s14 = sshll.u32 %s3798_s8, 4  ;;  %s784_s25 = int_to_ptr.vmem [resolvable:$true] %s783_s25  ;;  %s3687_s14 = int_to_ptr.vmem [resolvable:$false] %s3686_s14 }
  0xcc   : > { %s3681_s9 = scalar_lea.vmem %s784_s25, 16  ;;  %s3688_s30 = scalar_lea.vmem %s3687_s14, 32 }
  0xcd   : > { %p3682_p1 = scmp.ne.s32.totalorder %s784_s25, %s3681_s9  ;;  %p3689_p11 = scmp.lt.s32.totalorder %s784_s25, %s3687_s14 }
  0xce   : > { %s781_s6 = scalar_lea.hbm %s4727_s2, %s4023_s17  ;;  %p3690_p4 = scmp.lt.s32.totalorder %s3688_s30, %s3681_s9 }
  0xcf   : > { %p3684_p2 = pnand %p3682_p1, %p3982_p12 }
  0xd0   : > { %p3691_p5 = por %p3690_p4, %p3689_p11 }
  0xd1   : > { %p3685_p3 = pneg %p3684_p2 }
  0xd3   : > { %p3692_p6 = pnand %p3691_p5, %p3685_p3 }
  0xd5   : > { %3695 = shalt.err (!%p3692_p6)
}
  0xd6   : > { %3277 = dma.hbm_to_vmem [thread:$0]  (!%p3963_p10), %s781_s6, 16, %s784_s25, %s753_s26  }
  0xd7   : > { %792 = sbr.rel (%p4002_p7) target bundleno = 4072 (0xfe8), region = 88  ;;  %s4729_s11 = sld [smem:[#allocation26_spill]] (!%p4002_p7) }
  0xdd   : > { %s4152_s28 = sand.u32 1, %s4729_s11  }
  0xde   : > { %s795_s4 = scalar_lea.sflag [#allocation4], %s4152_s28 }
  0xdf   : > { %3729 = dma.done.wait (%p3956_p9), %s795_s4, 16  }
  0xe0   : > { %3731 = vsyncadd (%p3956_p9), %s795_s4, 4294967280  ;;  %s4731_s21 = sld [smem:[#allocation32_spill]]  ;;  %s2894_s26 = sshll.u32 %s4152_s28, 7 }
  0xe1   : > { %s4163_s20 = scalar_lea.vmem [#allocation5], %s2894_s26 }
  0xe6   : > { %s4732_s27 = sadd.s32 4294967295, %s4731_s21  }
  0xe7   : > { %s802_s19 = sand.u32 1, %s4732_s27  }
  0xe8   : > { %s803_s24 = scalar_lea.sflag [#allocation6], %s802_s19 }
  0xe9   : > { %3733 = dma.done.wait (%p3956_p9), %s803_s24, 2064  }
  0xea   : > { %3735 = vsyncadd (%p3956_p9), %s803_s24, 4294965232  ;;  %s820_s16 = scalar_lea.sflag [#allocation9], %s802_s19  ;;  %s4170_s1 = scalar_lea.vmem [#allocation8], %s2894_s26 }
  0xeb   : > { %3737 = dma.done.wait (%p3956_p9), %s820_s16, 2064  }
  0xec   : > { %3739 = vsyncadd (%p3956_p9), %s820_s16, 4294965232  ;;  %s837_s2 = scalar_lea.sflag [#allocation12], %s802_s19  ;;  %s4177_s6 = scalar_lea.vmem [#allocation11], %s2894_s26 }
  0xed   : > { %3741 = dma.done.wait (%p3956_p9), %s837_s2, 2064  }
  0xee   : > { %3743 = vsyncadd (%p3956_p9), %s837_s2, 4294965232  ;;  %s854_s25 = scalar_lea.sflag [#allocation15], %s802_s19 }
  0xef   : > { %3745 = dma.done.wait (%p3956_p9), %s854_s25, 8208  }
  0xf0   : > { %3747 = vsyncadd (%p3956_p9), %s854_s25, 4294959088  ;;  %s2897_s8 = sshll.u32 %s4152_s28, 9  ;;  %s871_s30 = scalar_lea.sflag [#allocation18], %s802_s19 }
  0xf1   : > { %s4190_s14 = scalar_lea.vmem [#allocation16], %s2897_s8  ;;  %s4192_s23 = scalar_lea.vmem [#allocation17], %s2897_s8 }
  0xf2   : > { %3749 = dma.done.wait (%p3956_p9), %s871_s30, 8208  }
  0xf3   : > { %3751 = vsyncadd (%p3956_p9), %s871_s30, 4294959088  ;;  %s4733_s11 = sld [smem:[#allocation29_spill]] }
  0xf4   : > { %s4734_s4 = sld [smem:[#allocation28_spill]] }
  0xf5   : > { %s4735_s17 = sld [smem:[#allocation38_spill]] }
  0xf6   : > { %s4736_s25 = sld [smem:[#allocation39_spill]] }
  0xf7   : > { %s4737_s0 = sld [smem:[#allocation40_spill]] }
  0xf8   : > { %s4739_s19 = sld [smem:[#allocation49_spill]] }
  0xf9   : > { %p998_p10 = scmp.lt.s32.totalorder %s4733_s11, 1  ;;  %s4740_s15 = sld [smem:[#allocation52_spill]] }
  0xfa   : > { %p1006_p12 = scmp.lt.s32.totalorder %s4734_s4, 1  ;;  %p2904_p9 = scmp.ne.s32.totalorder %s4734_s4, 0 }
  0xfb   : > { %s4766_s11 = smov (!%p998_p10, %s4733_s11), 1 }
  0xfc   : > { %s4202_s21 = scalar_select %p1006_p12, %s4734_s4, 1 }
  0xfd   : > { %s4204_s27 = sshll.u32 %s4766_s11, 2  ;;  %s4738_s11 = sld [smem:[#allocation46_spill]] }
  0xfe   : > { %s1001_s24 = scalar_lea.vmem %s4735_s17, %s4204_s27  ;;  %s1005_s8 = scalar_lea.vmem %s4736_s25, %s4204_s27 }
  0xff   : > { %s1008_s18 = scalar_lea.vmem %s4737_s0, %s4202_s21  ;;  %s2901_s22 = sshll.u32 %s4202_s21, 2 }
 0x100   : > { %s1015_s26 = scalar_lea.vmem %s4739_s19, %s4202_s21  ;;  %s4231_s29 = scalar_lea.vmem %s4740_s15, %s2901_s22 }
 0x101   : > { %s4741_s25 = sld [smem:[#allocation55_spill]]  ;;  %s882_s0 = scalar_lea.vmem [#allocation19], %s4152_s28 }
 0x103   : > { %s4222_s5 = scalar_lea.vmem %s4738_s11, %s2901_s22  ;;  %1027 = sbr.rel (%p2904_p9) target bundleno = 266 (0x10a), region = 136 }
 0x107   : > { %s1023_s9 = scalar_lea.vmem %s4741_s25, %s4204_s27 }
 0x108   : > { %v1028_v0 = vld [vmem:[%s1001_s24] sm:$0xf] }
 0x109   : > { %1029 = vst [vmem:[#allocation2] sm:$0xf] %v1028_v0 }
 0x10a PF: > { %vm1033_vm0 = vcmask 1043456   ;;  %v1077_v3 = vld [vmem:[%s4163_s20 + $0x78] sm:$0xff]  ;;  %v3799_v5 = vmov 0.0   ;;  %v1076_v6 = vld [vmem:[%s4163_s20 + $0x70] sm:$0xff]  ;;  %v1075_v8 = vld [vmem:[%s4163_s20 + $0x68] sm:$0xff]  ;;  %vm3800_vm1 = vmmov 0  }
 0x10b   : > { %v1170_v4 = vld [vmem:[%s4170_s1 + $0x78] sm:$0xff]  ;;  %3077 = vmatprep.subr.mxu0 %v3799_v5  ;;  %3112 = vmatprep.subr.mxu1 %v3799_v5  ;;  %v1169_v7 = vld [vmem:[%s4170_s1 + $0x70] sm:$0xff]  ;;  %v1168_v9 = vld [vmem:[%s4170_s1 + $0x68] sm:$0xff]  ;;  %s4743_s13 = scalar_lea.vmem [#allocation3], %s4152_s28  ;;  %s4744_s15 = scalar_lea.vmem [#allocation7], %s4152_s28  ;;  %vm1250_vm2 = vcmask 261120  }
 0x10c   : > { %3078 = vmatpush3.msra.mxu0 %v1077_v3  ;;  %3113 = vmatpush3.msra.mxu1 %v1170_v4  ;;  %v1074_v10 = vld [vmem:[%s4163_s20 + $0x60] sm:$0xff]  ;;  %v1073_v17 = vld [vmem:[%s4163_s20 + $0x58] sm:$0xff]  ;;  %v1072_v19 = vld [vmem:[%s4163_s20 + $0x50] sm:$0xff]  ;;  %s4745_s12 = scalar_lea.vmem [#allocation10], %s4152_s28  ;;  %vm1327_vm3 = vcmask 27648   ;;  %vm1339_vm4 = vcmask 31744  }
 0x10d   : > { %3079 = vmatprep.subr.mxu0 %v3799_v5  ;;  %3114 = vmatprep.subr.mxu1 %v3799_v5  ;;  %v1167_v11 = vld [vmem:[%s4170_s1 + $0x60] sm:$0xff]  ;;  %v1166_v18 = vld [vmem:[%s4170_s1 + $0x58] sm:$0xff]  ;;  %v1165_v20 = vld [vmem:[%s4170_s1 + $0x50] sm:$0xff]  ;;  %s3803_s4 = smov 32   ;;  %vm1927_vm5 = vcmask 523264   ;;  %vm1929_vm6 = vcmask 785408  }
 0x10e   : > { %3080 = vmatpush3.msra.mxu0 %v1076_v6  ;;  %3115 = vmatpush3.msra.mxu1 %v1169_v7  ;;  %v1071_v21 = vld [vmem:[%s4163_s20 + $0x48] sm:$0xff]  ;;  %v1070_v23 = vld [vmem:[%s4163_s20 + $0x40] sm:$0xff]  ;;  %v1069_v25 = vld [vmem:[%s4163_s20 + $0x38] sm:$0xff] }
 0x10f   : > { %3081 = vmatprep.subr.mxu0 %v3799_v5  ;;  %3116 = vmatprep.subr.mxu1 %v3799_v5  ;;  %v1164_v22 = vld [vmem:[%s4170_s1 + $0x48] sm:$0xff]  ;;  %v1163_v24 = vld [vmem:[%s4170_s1 + $0x40] sm:$0xff]  ;;  %v1162_v26 = vld [vmem:[%s4170_s1 + $0x38] sm:$0xff] }
 0x110   : > { %v4239_v1 = vld [vmem:[#allocation2] sm:$0xf]  ;;  %3082 = vmatpush3.msra.mxu0 %v1075_v8  ;;  %3117 = vmatpush3.msra.mxu1 %v1168_v9  ;;  %v1068_v27 = vld [vmem:[%s4163_s20 + $0x30] sm:$0xff]  ;;  %v1067_v29 = vld [vmem:[%s4163_s20 + $0x28] sm:$0xff] }
 0x111   : > { %v1034_v2 = vsel %vm1033_vm0, %v4239_v1, 0.0  ;;  %3083 = vmatprep.subr.mxu0 %v3799_v5  ;;  %3118 = vmatprep.subr.mxu1 %v3799_v5  ;;  %v1161_v28 = vld [vmem:[%s4170_s1 + $0x30] sm:$0xff]  ;;  %v1160_v30 = vld [vmem:[%s4170_s1 + $0x28] sm:$0xff]  ;;  %v1066_v31 = vld [vmem:[%s4163_s20 + $0x20] sm:$0xff] }
 0x112   : > { %1035 = vadd.xlane.f32.xlu0 %v1034_v2  ;;  %3084 = vmatpush3.msra.mxu0 %v1074_v10  ;;  %v1159_v32 = vld [vmem:[%s4170_s1 + $0x20] sm:$0xff]  ;;  %v1065_v33 = vld [vmem:[%s4163_s20 + $0x18] sm:$0xff]  ;;  %v1064_v35 = vld [vmem:[%s4163_s20 + $0x10] sm:$0xff] }
 0x113   : > { %3119 = vmatpush3.msra.mxu1 %v1167_v11  ;;  %3085 = vmatprep.subr.mxu0 %v3799_v5  ;;  %v1158_v34 = vld [vmem:[%s4170_s1 + $0x18] sm:$0xff]  ;;  %v1157_v36 = vld [vmem:[%s4170_s1 + $0x10] sm:$0xff]  ;;  %v1063_v37 = vld [vmem:[%s4163_s20 + $0x8] sm:$0xff] }
 0x114   : > { %3120 = vmatprep.subr.mxu1 %v3799_v5  ;;  %3086 = vmatpush3.msra.mxu0 %v1073_v17  ;;  %v1156_v38 = vld [vmem:[%s4170_s1 + $0x8] sm:$0xff]  ;;  %v1062_v39 = vld [vmem:[%s4163_s20] sm:$0xff]  ;;  %v2905_v45 = vld [vmem:[%s1008_s18] ss:$0 sm:$0xff]  ;;  %s3801_s20 = smov 96  }
 0x115   : > { %3121 = vmatpush3.msra.mxu1 %v1166_v18  ;;  %3087 = vmatprep.subr.mxu0 %v3799_v5  ;;  %v1155_v40 = vld [vmem:[%s4170_s1] sm:$0xff]  ;;  %v2906_v47 = vld [vmem:[%s4743_s13] ss:$0 sm:$0xff] }
 0x116   : > { %3122 = vmatprep.subr.mxu1 %v3799_v5  ;;  %3088 = vmatpush3.msra.mxu0 %v1072_v19  ;;  %v2907_v50 = vld [vmem:[%s4744_s15] ss:$0 sm:$0xff] }
 0x117   : > { %3123 = vmatpush3.msra.mxu1 %v1165_v20  ;;  %3089 = vmatprep.subr.mxu0 %v3799_v5  ;;  %v2908_v54 = vld [vmem:[%s4745_s12] ss:$0 sm:$0xff] }
 0x118   : > { %3124 = vmatprep.subr.mxu1 %v3799_v5  ;;  %3090 = vmatpush3.msra.mxu0 %v1071_v21  ;;  %v4342_v57 = vld [vmem:[%s4222_s5] sm:$0xf]  ;;  %s3802_s5 = smov 64  }
 0x119   : > { %3125 = vmatpush3.msra.mxu1 %v1164_v22  ;;  %3091 = vmatprep.subr.mxu0 %v3799_v5  ;;  %v4359_v59 = vld [vmem:[%s1005_s8] sm:$0xf] }
 0x11a   : > { %3126 = vmatprep.subr.mxu1 %v3799_v5  ;;  %3092 = vmatpush3.msra.mxu0 %v1070_v23 }
 0x11b   : > { %3127 = vmatpush3.msra.mxu1 %v1163_v24  ;;  %3093 = vmatprep.subr.mxu0 %v3799_v5 }
 0x11c   : > { %3128 = vmatprep.subr.mxu1 %v3799_v5  ;;  %3094 = vmatpush3.msra.mxu0 %v1069_v25 }
 0x11d   : > { %3129 = vmatpush3.msra.mxu1 %v1162_v26  ;;  %3095 = vmatprep.subr.mxu0 %v3799_v5 }
 0x11e   : > { %3130 = vmatprep.subr.mxu1 %v3799_v5  ;;  %3096 = vmatpush3.msra.mxu0 %v1068_v27 }
 0x11f   : > { %3131 = vmatpush3.msra.mxu1 %v1161_v28  ;;  %3097 = vmatprep.subr.mxu0 %v3799_v5 }
 0x120   : > { %3132 = vmatprep.subr.mxu1 %v3799_v5  ;;  %3098 = vmatpush3.msra.mxu0 %v1067_v29 }
 0x121   : > { %3133 = vmatpush3.msra.mxu1 %v1160_v30  ;;  %3099 = vmatprep.subr.mxu0 %v3799_v5 }
 0x122   : > { %3134 = vmatprep.subr.mxu1 %v3799_v5  ;;  %3100 = vmatpush3.msra.mxu0 %v1066_v31 }
 0x123   : > { %3135 = vmatpush3.msra.mxu1 %v1159_v32  ;;  %3101 = vmatprep.subr.mxu0 %v3799_v5 }
 0x124   : > { %3136 = vmatprep.subr.mxu1 %v3799_v5  ;;  %3102 = vmatpush3.msra.mxu0 %v1065_v33 }
 0x125   : > { %3137 = vmatpush3.msra.mxu1 %v1158_v34  ;;  %3103 = vmatprep.subr.mxu0 %v3799_v5 }
 0x126   : > { %3138 = vmatprep.subr.mxu1 %v3799_v5  ;;  %3104 = vmatpush3.msra.mxu0 %v1064_v35 }
 0x127   : > { %3139 = vmatpush3.msra.mxu1 %v1157_v36  ;;  %3105 = vmatprep.subr.mxu0 %v3799_v5 }
 0x128   : > { %3140 = vmatprep.subr.mxu1 %v3799_v5  ;;  %3106 = vmatpush3.msra.mxu0 %v1063_v37 }
 0x129   : > { %3141 = vmatpush3.msra.mxu1 %v1156_v38  ;;  %3107 = vmatprep.subr.mxu0 %v3799_v5 }
 0x12a   : > { %3142 = vmatprep.subr.mxu1 %v3799_v5  ;;  %3108 = vmatpush3.msra.mxu0 %v1062_v39 }
 0x12b   : > { %3109 = vmatprep.mubr.msk.f32.mxu0 %vm3800_vm1, %v3799_v5  ;;  %3143 = vmatpush3.msra.mxu1 %v1155_v40 }
 0x12c   : > { %3144 = vmatprep.mubr.msk.f32.mxu1 %vm3800_vm1, %v3799_v5  ;;  %3147 = vmatprep.subr.mxu1 %v3799_v5 }
 0x12d   : > { %3187 = vmatprep.subr.mxu0 %v3799_v5 }
 0x19b   : > { %v1036_v12 = vpop.xlane.xlu0 %1035 }
 0x19c   : > { %v1038_v13 = vmul.f32 0.0078125, %v1036_v12 }
 0x19e   : > { %v4262_v14 = vsub.f32 %v4239_v1, %v1038_v13 }
 0x1a0   : > { %v1040_v15 = vmul.f32 %v4262_v14, %v4262_v14 }
 0x1a2   : > { %v1041_v16 = vsel %vm1033_vm0, %v1040_v15, 0.0 }
 0x1a3   : > { %1042 = vadd.xlane.f32.xlu0 %v1041_v16 }
 0x22c   : > { %v1043_v41 = vpop.xlane.xlu0 %1042 }
 0x22d   : > { %v1044_v42 = vmul.f32 0.0078125, %v1043_v41 }
 0x22f   : > { %v1045_v43 = vadd.f32 1e-05, %v1044_v42 }
 0x231   : > { %3352 = vrsqrt.f32 %v1045_v43 }
 0x23e   : > { %v3353_v44 = vpop.eup %3352 }
 0x23f   : > { %v1047_v46 = vmul.f32 %v3353_v44, %v4262_v14 }
 0x241   : > { %v1054_v48 = vmul.f32 %v2905_v45, %v1047_v46 }
 0x243   : > { %v1061_v49 = vadd.f32 %v2906_v47, %v1054_v48 }
 0x245   : > { %3110 = vmatmul.mubr.f32.vlgmr.msra.gmra.mxu0 %v1061_v49  ;;  %3145 = vmatmul.mubr.f32.vlgmr.msra.gmra.mxu1 %v1061_v49 }
 0x246   : > { %3149 = vmatprep.mubr.msk.f32.mxu1 %vm3800_vm1, %v3799_v5  ;;  %3219 = vmatprep.mubr.msk.f32.mxu0 %vm3800_vm1, %v3799_v5 }
 0x305   : > { %v1151_v51 = vpop.f32.mrf.mxu0  ;;  %v1244_v52 = vpop.f32.mrf.mxu1 }
 0x306   : > { %v4333_v53 = vadd.f32 %v2907_v50, %v1151_v51  ;;  %v4345_v58 = vadd.f32 %v2908_v54, %v1244_v52 }
 0x307   : > { %v3111_v55 = vpop.f32.mrf.mxu0  ;;  %v3146_v56 = vpop.f32.mrf.mxu1 }
 0x308   : > { %1418 = vrot.lane.b32.xlu0 %v4333_v53, %s3801_s20  ;;  %3148 = vmatpush3.xpose.msk.msra.mxu1 %vm1250_vm2, %v4333_v53 }
 0x309   : > { %3152 = vmatprep.subr.mxu1 %v3799_v5 }
 0x30b   : > { %3150 = vmatmul.mubr.msk.f32.vlgmr.msra.gmra.mxu1 %vm1250_vm2, %v4342_v57 }
 0x30c   : > { %3153 = vmatpush3.msk.msra.mxu1 %vm1033_vm0, %v4345_v58  ;;  %3154 = vmatprep.mubr.msk.f32.mxu1 %vm3800_vm1, %v3799_v5 }
 0x30d   : > { %3157 = vmatprep.subr.mxu1 %v3799_v5 }
 0x37a   : > { %v1419_v10 = vpop.permute.xlu0 %1418 }
 0x3cb   : > { %v1323_v60 = vpop.f32.mrf.mxu1 }
 0x3cc   : > { %v1324_v61 = vadd.f32 %v1323_v60, %v4359_v59 }
 0x3cd   : > { %v3151_v62 = vpop.f32.mrf.mxu1 }
 0x3ce   : > { %v1328_v63 = vsel %vm1327_vm3, %v1324_v61, -inf  ;;  %v1945_v62 = vld [vmem:[%s4177_s6 + $0x70] sm:$0xff] }
 0x3cf   : > { %1329 = vmax.xlane.f32.xlu1 %v1328_v63  ;;  %v1944_v63 = vld [vmem:[%s4177_s6 + $0x68] sm:$0xff] }
 0x458   : > { %v1330_v0 = vpop.xlane.xlu1 %1329 }
 0x459   : > { %v1331_v2 = vsub.f32 %v1324_v61, %v1330_v0  ;;  %v1946_v61 = vld [vmem:[%s4177_s6 + $0x78] sm:$0xff]  ;;  %v1943_v0 = vld [vmem:[%s4177_s6 + $0x60] sm:$0xff] }
 0x45a   : > { %3188 = vmatpush3.msra.mxu0 %v1946_v61  ;;  %v2089_v61 = vld [vmem:[%s4190_s14 + $0x118] sm:$0xff] }
 0x45b   : > { %v1332_v3 = vmul.f32 1.442695, %v1331_v2  ;;  %3189 = vmatprep.subr.mxu0 %v3799_v5  ;;  %v1942_v2 = vld [vmem:[%s4177_s6 + $0x58] sm:$0xff] }
 0x45c   : > { %3190 = vmatpush3.msra.mxu0 %v1945_v62  ;;  %v2086_v62 = vld [vmem:[%s4190_s14 + $0x100] sm:$0xff] }
 0x45d   : > { %3354 = vpow2.f32 %v1332_v3  ;;  %3191 = vmatprep.subr.mxu0 %v3799_v5  ;;  %v1941_v3 = vld [vmem:[%s4177_s6 + $0x50] sm:$0xff] }
 0x45e   : > { %3192 = vmatpush3.msra.mxu0 %v1944_v63  ;;  %v2088_v63 = vld [vmem:[%s4190_s14 + $0x110] sm:$0xff] }
 0x45f   : > { %3193 = vmatprep.subr.mxu0 %v3799_v5 }
 0x460   : > { %3194 = vmatpush3.msra.mxu0 %v1943_v0  ;;  %v2083_v0 = vld [vmem:[%s4190_s14 + $0xe8] sm:$0xff] }
 0x461   : > { %3195 = vmatprep.subr.mxu0 %v3799_v5 }
 0x462   : > { %3196 = vmatpush3.msra.mxu0 %v1942_v2  ;;  %v2085_v2 = vld [vmem:[%s4190_s14 + $0xf8] sm:$0xff] }
 0x463   : > { %3197 = vmatprep.subr.mxu0 %v3799_v5 }
 0x464   : > { %3198 = vmatpush3.msra.mxu0 %v1941_v3  ;;  %v2082_v3 = vld [vmem:[%s4190_s14 + $0xe0] sm:$0xff] }
 0x465   : > { %3199 = vmatprep.subr.mxu0 %v3799_v5 }
 0x46a   : > { %v3355_v4 = vpop.eup %3354 }
 0x46b   : > { %v1334_v6 = vsel %vm1327_vm3, %v3355_v4, 0.0 }
 0x46c   : > { %1335 = vadd.xlane.f32.xlu1 %v1334_v6  ;;  %v1939_v6 = vld [vmem:[%s4177_s6 + $0x40] sm:$0xff] }
 0x47d   : > { %1416 = vrot.lane.b32.xlu1 %v4342_v57, %s3801_s20 }
 0x4f5   : > { %v1336_v7 = vpop.xlane.xlu1 %1335 }
 0x4f6   : > { %3356 = vrcp.f32 %v1336_v7  ;;  %v1938_v7 = vld [vmem:[%s4177_s6 + $0x38] sm:$0xff] }
 0x4f9   : > { %v1417_v11 = vpop.permute.xlu1 %1416 }
 0x503   : > { %v3357_v8 = vpop.eup %3356 }
 0x504   : > { %v1338_v9 = vmul.f32 %v3357_v8, %v3355_v4  ;;  %v1940_v4 = vld [vmem:[%s4177_s6 + $0x48] sm:$0xff]  ;;  %v1937_v8 = vld [vmem:[%s4177_s6 + $0x30] sm:$0xff] }
 0x505   : > { %3200 = vmatpush3.msra.mxu0 %v1940_v4  ;;  %v2084_v4 = vld [vmem:[%s4190_s14 + $0xf0] sm:$0xff] }
 0x506   : > { %3155 = vmatmul.mubr.msk.f32.vlgmr.msra.gmra.mxu1 %vm1339_vm4, %v1338_v9  ;;  %3201 = vmatprep.subr.mxu0 %v3799_v5  ;;  %v1936_v9 = vld [vmem:[%s4177_s6 + $0x28] sm:$0xff] }
 0x507   : > { %3158 = vmatpush3.xpose.msk.msra.mxu1 %vm1250_vm2, %v1419_v10  ;;  %3159 = vmatprep.mubr.msk.f32.mxu1 %vm3800_vm1, %v3799_v5  ;;  %v1935_v10 = vld [vmem:[%s4177_s6 + $0x20] sm:$0xff] }
 0x508   : > { %3162 = vmatprep.subr.mxu1 %v3799_v5  ;;  %3202 = vmatpush3.msra.mxu0 %v1939_v6  ;;  %v2079_v6 = vld [vmem:[%s4190_s14 + $0xc8] sm:$0xff] }
 0x509   : > { %3203 = vmatprep.subr.mxu0 %v3799_v5 }
 0x50a   : > { %3160 = vmatmul.mubr.msk.f32.vlgmr.msra.gmra.mxu1 %vm1250_vm2, %v1417_v11  ;;  %3204 = vmatpush3.msra.mxu0 %v1938_v7  ;;  %v1934_v11 = vld [vmem:[%s4177_s6 + $0x18] sm:$0xff] }
 0x50b   : > { %3164 = vmatprep.mubr.msk.f32.mxu1 %vm3800_vm1, %v3799_v5  ;;  %3205 = vmatprep.subr.mxu0 %v3799_v5  ;;  %v2081_v7 = vld [vmem:[%s4190_s14 + $0xd8] sm:$0xff] }
 0x50c   : > { %3206 = vmatpush3.msra.mxu0 %v1937_v8  ;;  %v2078_v8 = vld [vmem:[%s4190_s14 + $0xc0] sm:$0xff] }
 0x50d   : > { %3207 = vmatprep.subr.mxu0 %v3799_v5 }
 0x50e   : > { %3208 = vmatpush3.msra.mxu0 %v1936_v9  ;;  %v2080_v9 = vld [vmem:[%s4190_s14 + $0xd0] sm:$0xff] }
 0x50f   : > { %3209 = vmatprep.subr.mxu0 %v3799_v5 }
 0x510   : > { %3210 = vmatpush3.msra.mxu0 %v1935_v10  ;;  %v2075_v10 = vld [vmem:[%s4190_s14 + $0xa8] sm:$0xff] }
 0x511   : > { %3211 = vmatprep.subr.mxu0 %v3799_v5 }
 0x512   : > { %3212 = vmatpush3.msra.mxu0 %v1934_v11  ;;  %v2077_v11 = vld [vmem:[%s4190_s14 + $0xb8] sm:$0xff] }
 0x513   : > { %3213 = vmatprep.subr.mxu0 %v3799_v5 }
 0x5c6   : > { %v4374_v12 = vpop.f32.mrf.mxu1 }
 0x5c8   : > { %v3156_v13 = vpop.f32.mrf.mxu1 }
 0x5c9   : > { %v1933_v13 = vld [vmem:[%s4177_s6 + $0x10] sm:$0xff] }
 0x5ca   : > { %v1490_v14 = vpop.f32.mrf.mxu1  ;;  %3214 = vmatpush3.msra.mxu0 %v1933_v13  ;;  %v2074_v13 = vld [vmem:[%s4190_s14 + $0xa0] sm:$0xff] }
 0x5cb   : > { %v1491_v15 = vadd.f32 %v1490_v14, %v4359_v59  ;;  %v1932_v14 = vld [vmem:[%s4177_s6 + $0x8] sm:$0xff]  ;;  %3215 = vmatprep.subr.mxu0 %v3799_v5 }
 0x5cc   : > { %v3161_v16 = vpop.f32.mrf.mxu1  ;;  %3216 = vmatpush3.msra.mxu0 %v1932_v14  ;;  %v2076_v14 = vld [vmem:[%s4190_s14 + $0xb0] sm:$0xff] }
 0x5cd   : > { %v1494_v17 = vsel %vm1327_vm3, %v1491_v15, -inf  ;;  %3217 = vmatprep.subr.mxu0 %v3799_v5 }
 0x5ce   : > { %1495 = vmax.xlane.f32.xlu1 %v1494_v17 }
 0x5df   : > { %1584 = vrot.lane.b32.xlu1 %v4333_v53, %s3802_s5 }
 0x5e3   : > { %1582 = vrot.lane.b32.xlu1 %v4342_v57, %s3802_s5 }
 0x657   : > { %v1496_v18 = vpop.xlane.xlu1 %1495 }
 0x658   : > { %v1497_v19 = vsub.f32 %v1491_v15, %v1496_v18  ;;  %v1931_v15 = vld [vmem:[%s4177_s6] sm:$0xff]  ;;  %s4747_s6 = scalar_lea.vmem [#allocation13], %s4152_s28 }
 0x659   : > { %3218 = vmatpush3.msra.mxu0 %v1931_v15  ;;  %v2071_v15 = vld [vmem:[%s4190_s14 + $0x88] sm:$0xff] }
 0x65a   : > { %v1498_v20 = vmul.f32 1.442695, %v1497_v19 }
 0x65b   : > { %v1585_v26 = vpop.permute.xlu1 %1584 }
 0x65c   : > { %3358 = vpow2.f32 %v1498_v20 }
 0x65f   : > { %v1583_v28 = vpop.permute.xlu1 %1582 }
 0x669   : > { %v3359_v21 = vpop.eup %3358 }
 0x66a   : > { %v1500_v22 = vsel %vm1327_vm3, %v3359_v21, 0.0 }
 0x66b   : > { %1501 = vadd.xlane.f32.xlu0 %v1500_v22 }
 0x681   : > { %1505 = vrot.lane.b32.xlu0 %v4345_v58, %s3801_s20 }
 0x6f4   : > { %v1502_v23 = vpop.xlane.xlu0 %1501 }
 0x6f5   : > { %3360 = vrcp.f32 %v1502_v23 }
 0x6f8   : > { %v1506_v24 = vpop.permute.xlu0 %1505 }
 0x6f9   : > { %3163 = vmatpush3.msk.msra.mxu1 %vm1033_vm0, %v1506_v24  ;;  %v2925_v24 = vld [vmem:[%s4747_s6] ss:$0 sm:$0xff] }
 0x6fa   : > { %3167 = vmatprep.subr.mxu1 %v3799_v5 }
 0x702   : > { %v3361_v25 = vpop.eup %3360 }
 0x703   : > { %v1504_v27 = vmul.f32 %v3361_v25, %v3359_v21 }
 0x705   : > { %3165 = vmatmul.mubr.msk.f32.vlgmr.msra.gmra.mxu1 %vm1339_vm4, %v1504_v27 }
 0x706   : > { %3168 = vmatpush3.xpose.msk.msra.mxu1 %vm1250_vm2, %v1585_v26  ;;  %3169 = vmatprep.mubr.msk.f32.mxu1 %vm3800_vm1, %v3799_v5 }
 0x707   : > { %3172 = vmatprep.subr.mxu1 %v3799_v5 }
 0x709   : > { %3170 = vmatmul.mubr.msk.f32.vlgmr.msra.gmra.mxu1 %vm1250_vm2, %v1583_v28 }
 0x70a   : > { %3174 = vmatprep.mubr.msk.f32.mxu1 %vm3800_vm1, %v3799_v5 }
 0x7c5   : > { %v1578_v29 = vpop.f32.mrf.mxu1 }
 0x7c7   : > { %v3166_v30 = vpop.f32.mrf.mxu1 }
 0x7c8   : > { %v2117_v30 = vld [vmem:[%s4190_s14 + $0x1f8] sm:$0xff] }
 0x7c9   : > { %v1656_v31 = vpop.f32.mrf.mxu1  ;;  %2211 = vmatprep.subr.mxu0 %v2117_v30  ;;  %v2060_v30 = vld [vmem:[%s4190_s14 + $0x30] sm:$0xff] }
 0x7ca   : > { %v1657_v32 = vadd.f32 %v1656_v31, %v4359_v59  ;;  %v2116_v31 = vld [vmem:[%s4190_s14 + $0x1f0] sm:$0xff] }
 0x7cb   : > { %v3171_v33 = vpop.f32.mrf.mxu1 }
 0x7cc   : > { %v1660_v34 = vsel %vm1327_vm3, %v1657_v32, -inf  ;;  %v2113_v33 = vld [vmem:[%s4190_s14 + $0x1d8] sm:$0xff] }
 0x7cd   : > { %1661 = vmax.xlane.f32.xlu1 %v1660_v34  ;;  %v2112_v34 = vld [vmem:[%s4190_s14 + $0x1d0] sm:$0xff] }
 0x7de   : > { %1750 = vrot.lane.b32.xlu1 %v4333_v53, %s3803_s4 }
 0x7e2   : > { %1748 = vrot.lane.b32.xlu1 %v4342_v57, %s3803_s4 }
 0x856   : > { %v1662_v35 = vpop.xlane.xlu1 %1661 }
 0x857   : > { %v1663_v36 = vsub.f32 %v1657_v32, %v1662_v35  ;;  %v2111_v32 = vld [vmem:[%s4190_s14 + $0x1c8] sm:$0xff] }
 0x858   : > { %v2107_v35 = vld [vmem:[%s4190_s14 + $0x1a8] sm:$0xff] }
 0x859   : > { %v1664_v37 = vmul.f32 1.442695, %v1663_v36  ;;  %v2109_v36 = vld [vmem:[%s4190_s14 + $0x1b8] sm:$0xff] }
 0x85a   : > { %v1751_v43 = vpop.permute.xlu1 %1750 }
 0x85b   : > { %3362 = vpow2.f32 %v1664_v37  ;;  %v2106_v37 = vld [vmem:[%s4190_s14 + $0x1a0] sm:$0xff] }
 0x85e   : > { %v1749_v45 = vpop.permute.xlu1 %1748 }
 0x868   : > { %v3363_v38 = vpop.eup %3362 }
 0x869   : > { %v1666_v39 = vsel %vm1327_vm3, %v3363_v38, 0.0 }
 0x86a   : > { %1667 = vadd.xlane.f32.xlu0 %v1666_v39  ;;  %v2103_v39 = vld [vmem:[%s4190_s14 + $0x188] sm:$0xff] }
 0x880   : > { %1671 = vrot.lane.b32.xlu0 %v4345_v58, %s3802_s5 }
 0x8f3   : > { %v1668_v40 = vpop.xlane.xlu0 %1667 }
 0x8f4   : > { %3364 = vrcp.f32 %v1668_v40  ;;  %v2105_v40 = vld [vmem:[%s4190_s14 + $0x198] sm:$0xff] }
 0x8f7   : > { %v1672_v41 = vpop.permute.xlu0 %1671 }
 0x8f8   : > { %3173 = vmatpush3.msk.msra.mxu1 %vm1033_vm0, %v1672_v41  ;;  %v2102_v41 = vld [vmem:[%s4190_s14 + $0x180] sm:$0xff] }
 0x8f9   : > { %3177 = vmatprep.subr.mxu1 %v3799_v5 }
 0x901   : > { %v3365_v42 = vpop.eup %3364 }
 0x902   : > { %v1670_v44 = vmul.f32 %v3365_v42, %v3363_v38  ;;  %v2108_v38 = vld [vmem:[%s4190_s14 + $0x1b0] sm:$0xff] }
 0x903   : > { %v2104_v42 = vld [vmem:[%s4190_s14 + $0x190] sm:$0xff] }
 0x904   : > { %3175 = vmatmul.mubr.msk.f32.vlgmr.msra.gmra.mxu1 %vm1339_vm4, %v1670_v44 }
 0x905   : > { %3178 = vmatpush3.xpose.msk.msra.mxu1 %vm1250_vm2, %v1751_v43  ;;  %3179 = vmatprep.mubr.msk.f32.mxu1 %vm3800_vm1, %v3799_v5 }
 0x906   : > { %3182 = vmatprep.subr.mxu1 %v3799_v5 }
 0x908   : > { %3180 = vmatmul.mubr.msk.f32.vlgmr.msra.gmra.mxu1 %vm1250_vm2, %v1749_v45 }
 0x909   : > { %3184 = vmatprep.mubr.msk.f32.mxu1 %vm3800_vm1, %v3799_v5 }
 0x9c4   : > { %v1744_v46 = vpop.f32.mrf.mxu1 }
 0x9c6   : > { %v3176_v47 = vpop.f32.mrf.mxu1 }
 0x9c8   : > { %v1822_v48 = vpop.f32.mrf.mxu1 }
 0x9c9   : > { %v1823_v49 = vadd.f32 %v1822_v48, %v4359_v59  ;;  %v2099_v48 = vld [vmem:[%s4190_s14 + $0x168] sm:$0xff] }
 0x9ca   : > { %v3181_v50 = vpop.f32.mrf.mxu1 }
 0x9cb   : > { %v1826_v51 = vsel %vm1327_vm3, %v1823_v49, -inf  ;;  %v2098_v50 = vld [vmem:[%s4190_s14 + $0x160] sm:$0xff] }
 0x9cc   : > { %1827 = vmax.xlane.f32.xlu0 %v1826_v51  ;;  %v2100_v51 = vld [vmem:[%s4190_s14 + $0x170] sm:$0xff] }
 0x9e2   : > { %1837 = vrot.lane.b32.xlu0 %v4345_v58, %s3803_s4 }
 0x9e6   : > { %1919 = vrot.lane.b32.xlu0 %v1744_v46, %s3802_s5 }
 0xa55   : > { %v1828_v52 = vpop.xlane.xlu0 %1827 }
 0xa56   : > { %v1829_v53 = vsub.f32 %v1823_v49, %v1828_v52  ;;  %v2101_v49 = vld [vmem:[%s4190_s14 + $0x178] sm:$0xff]  ;;  %v2095_v52 = vld [vmem:[%s4190_s14 + $0x148] sm:$0xff] }
 0xa58   : > { %v1830_v54 = vmul.f32 1.442695, %v1829_v53  ;;  %v2097_v53 = vld [vmem:[%s4190_s14 + $0x158] sm:$0xff] }
 0xa59   : > { %v1838_v55 = vpop.permute.xlu0 %1837 }
 0xa5a   : > { %3366 = vpow2.f32 %v1830_v54  ;;  %3183 = vmatpush3.msk.msra.mxu1 %vm1033_vm0, %v1838_v55  ;;  %v2094_v54 = vld [vmem:[%s4190_s14 + $0x140] sm:$0xff]  ;;  %v2096_v55 = vld [vmem:[%s4190_s14 + $0x150] sm:$0xff] }
 0xa5d   : > { %v1920_v20 = vpop.permute.xlu0 %1919 }
 0xa67   : > { %v3367_v56 = vpop.eup %3366 }
 0xa68   : > { %v1832_v57 = vsel %vm1327_vm3, %v3367_v56, 0.0 }
 0xa69   : > { %1833 = vadd.xlane.f32.xlu1 %v1832_v57  ;;  %v2093_v57 = vld [vmem:[%s4190_s14 + $0x138] sm:$0xff] }
 0xa7a   : > { %1915 = vrot.lane.b32.xlu1 %v1578_v29, %s3803_s4  ;;  %v2115_v29 = vld [vmem:[%s4190_s14 + $0x1e8] sm:$0xff] }
 0xa7b   : > { %2140 = vmatprep.subr.mxu1 %v2115_v29  ;;  %v2058_v29 = vld [vmem:[%s4190_s14 + $0x20] sm:$0xff] }
 0xaf2   : > { %v1834_v58 = vpop.xlane.xlu1 %1833 }
 0xaf3   : > { %3368 = vrcp.f32 %v1834_v58  ;;  %v2090_v58 = vld [vmem:[%s4190_s14 + $0x120] sm:$0xff] }
 0xaf6   : > { %v1916_v18 = vpop.permute.xlu1 %1915 }
 0xaf7   : > { %v1926_v19 = vsel %vm1250_vm2, %v4374_v12, %v1916_v18  ;;  %v2072_v18 = vld [vmem:[%s4190_s14 + $0x90] sm:$0xff] }
 0xaf8   : > { %v1928_v21 = vsel %vm1927_vm5, %v1926_v19, %v1920_v20  ;;  %v2067_v19 = vld [vmem:[%s4190_s14 + $0x68] sm:$0xff]  ;;  %v2069_v20 = vld [vmem:[%s4190_s14 + $0x78] sm:$0xff] }
 0xb00   : > { %v3369_v59 = vpop.eup %3368 }
 0xb01   : > { %v1836_v60 = vmul.f32 %v3369_v59, %v3367_v56  ;;  %v2091_v56 = vld [vmem:[%s4190_s14 + $0x128] sm:$0xff]  ;;  %v2092_v59 = vld [vmem:[%s4190_s14 + $0x130] sm:$0xff] }
 0xb03   : > { %3185 = vmatmul.mubr.msk.f32.vlgmr.msra.gmra.mxu1 %vm1339_vm4, %v1836_v60  ;;  %v2087_v60 = vld [vmem:[%s4190_s14 + $0x108] sm:$0xff] }
 0xb04   : > { %2204 = vmatprep.mubr.f32.mxu1 %v3799_v5 }
 0xbc3   : > { %v1910_v16 = vpop.f32.mrf.mxu1 }
 0xbc4   : > { %1923 = vrot.lane.b32.xlu1 %v1910_v16, %s3801_s20  ;;  %v2073_v16 = vld [vmem:[%s4190_s14 + $0x98] sm:$0xff] }
 0xbc5   : > { %v3186_v17 = vpop.f32.mrf.mxu1 }
 0xbc6   : > { %v2070_v17 = vld [vmem:[%s4190_s14 + $0x80] sm:$0xff] }
 0xc36   : > { %v1924_v22 = vpop.permute.xlu1 %1923 }
 0xc37   : > { %v1930_v23 = vsel %vm1929_vm6, %v1928_v21, %v1924_v22  ;;  %v2066_v21 = vld [vmem:[%s4190_s14 + $0x60] sm:$0xff]  ;;  %v2068_v22 = vld [vmem:[%s4190_s14 + $0x70] sm:$0xff] }
 0xc38   : > { %3220 = vmatmul.mubr.f32.vlgmr.msra.gmra.mxu0 %v1930_v23  ;;  %v2063_v23 = vld [vmem:[%s4190_s14 + $0x48] sm:$0xff] }
 0xc39   : > { %2275 = vmatprep.mubr.f32.mxu0 %v3799_v5  ;;  %v2114_v5 = vld [vmem:[%s4190_s14 + $0x1e0] sm:$0xff]  ;;  %2212 = vmatpush1.msra.mxu0 %v2116_v31  ;;  %v2057_v31 = vld [vmem:[%s4190_s14 + $0x18] sm:$0xff] }
 0xc3a   : > { %2141 = vmatpush1.msra.mxu1 %v2114_v5  ;;  %2213 = vmatprep.subr.mxu0 %v2113_v33  ;;  %v2055_v5 = vld [vmem:[%s4190_s14 + $0x8] sm:$0xff]  ;;  %v2056_v33 = vld [vmem:[%s4190_s14 + $0x10] sm:$0xff] }
 0xc3b   : > { %2142 = vmatprep.subr.mxu1 %v2111_v32  ;;  %2214 = vmatpush1.msra.mxu0 %v2112_v34  ;;  %v2054_v32 = vld [vmem:[%s4190_s14] sm:$0xff] }
 0xc3c   : > { %2215 = vmatprep.subr.mxu0 %v2109_v36 }
 0xc3d   : > { %2216 = vmatpush1.msra.mxu0 %v2108_v38 }
 0xc3e   : > { %2217 = vmatprep.subr.mxu0 %v2105_v40 }
 0xc3f   : > { %2218 = vmatpush1.msra.mxu0 %v2104_v42  ;;  %v2345_v42 = vld [vmem:[%s4192_s23 + $0xf8] sm:$0xff] }
 0xc40   : > { %2219 = vmatprep.subr.mxu0 %v2101_v49  ;;  %v2360_v49 = vld [vmem:[%s4192_s23 + $0x170] sm:$0xff] }
 0xc41   : > { %2220 = vmatpush1.msra.mxu0 %v2100_v51  ;;  %v2375_v51 = vld [vmem:[%s4192_s23 + $0x1e8] sm:$0xff] }
 0xc42   : > { %2221 = vmatprep.subr.mxu0 %v2097_v53  ;;  %v2359_v53 = vld [vmem:[%s4192_s23 + $0x168] sm:$0xff] }
 0xc43   : > { %2222 = vmatpush1.msra.mxu0 %v2096_v55  ;;  %v2374_v55 = vld [vmem:[%s4192_s23 + $0x1e0] sm:$0xff] }
 0xc44   : > { %2223 = vmatprep.subr.mxu0 %v2093_v57  ;;  %v2358_v57 = vld [vmem:[%s4192_s23 + $0x160] sm:$0xff] }
 0xc45   : > { %2224 = vmatpush1.msra.mxu0 %v2092_v59  ;;  %v2373_v59 = vld [vmem:[%s4192_s23 + $0x1d8] sm:$0xff] }
 0xc46   : > { %2225 = vmatprep.subr.mxu0 %v2089_v61  ;;  %v2357_v61 = vld [vmem:[%s4192_s23 + $0x158] sm:$0xff] }
 0xc47   : > { %2226 = vmatpush1.msra.mxu0 %v2088_v63  ;;  %v2372_v63 = vld [vmem:[%s4192_s23 + $0x1d0] sm:$0xff] }
 0xc48   : > { %2227 = vmatprep.subr.mxu0 %v2085_v2  ;;  %v2356_v2 = vld [vmem:[%s4192_s23 + $0x150] sm:$0xff] }
 0xc49   : > { %2228 = vmatpush1.msra.mxu0 %v2084_v4  ;;  %v2371_v4 = vld [vmem:[%s4192_s23 + $0x1c8] sm:$0xff] }
 0xc4a   : > { %2229 = vmatprep.subr.mxu0 %v2081_v7  ;;  %v2355_v7 = vld [vmem:[%s4192_s23 + $0x148] sm:$0xff] }
 0xc4b   : > { %2230 = vmatpush1.msra.mxu0 %v2080_v9  ;;  %v2370_v9 = vld [vmem:[%s4192_s23 + $0x1c0] sm:$0xff] }
 0xc4c   : > { %2231 = vmatprep.subr.mxu0 %v2077_v11  ;;  %v2354_v11 = vld [vmem:[%s4192_s23 + $0x140] sm:$0xff] }
 0xc4d   : > { %2232 = vmatpush1.msra.mxu0 %v2076_v14  ;;  %v2369_v14 = vld [vmem:[%s4192_s23 + $0x1b8] sm:$0xff] }
 0xc4e   : > { %2233 = vmatprep.subr.mxu0 %v2073_v16  ;;  %v2353_v16 = vld [vmem:[%s4192_s23 + $0x138] sm:$0xff] }
 0xc4f   : > { %2234 = vmatpush1.msra.mxu0 %v2072_v18  ;;  %v2368_v18 = vld [vmem:[%s4192_s23 + $0x1b0] sm:$0xff] }
 0xc50   : > { %2235 = vmatprep.subr.mxu0 %v2069_v20  ;;  %v2352_v20 = vld [vmem:[%s4192_s23 + $0x130] sm:$0xff] }
 0xc51   : > { %2236 = vmatpush1.msra.mxu0 %v2068_v22  ;;  %v2367_v22 = vld [vmem:[%s4192_s23 + $0x1a8] sm:$0xff] }
 0xcf8   : > { %v2020_v25 = vpop.f32.mrf.mxu0 }
 0xcf9   : > { %v2021_v12 = vadd.f32 %v2925_v24, %v2020_v25  ;;  %v2065_v24 = vld [vmem:[%s4190_s14 + $0x58] sm:$0xff]  ;;  %v2062_v25 = vld [vmem:[%s4190_s14 + $0x40] sm:$0xff] }
 0xcfa   : > { %v3221_v26 = vpop.f32.mrf.mxu0  ;;  %2237 = vmatprep.subr.mxu0 %v2065_v24  ;;  %v2351_v24 = vld [vmem:[%s4192_s23 + $0x128] sm:$0xff] }
 0xcfb   : > { %v4462_v27 = vadd.f32 %v2021_v12, %v4239_v1  ;;  %v2110_v1 = vld [vmem:[%s4190_s14 + $0x1c0] sm:$0xff]  ;;  %v2064_v12 = vld [vmem:[%s4190_s14 + $0x50] sm:$0xff]  ;;  %v2059_v26 = vld [vmem:[%s4190_s14 + $0x28] sm:$0xff] }
 0xcfc   : > { %2143 = vmatpush1.msra.mxu1 %v2110_v1  ;;  %2238 = vmatpush1.msra.mxu0 %v2064_v12  ;;  %v2366_v12 = vld [vmem:[%s4192_s23 + $0x1a0] sm:$0xff] }
 0xcfd   : > { %v2027_v28 = vsel %vm1033_vm0, %v4462_v27, 0.0  ;;  %2144 = vmatprep.subr.mxu1 %v2107_v35 }
 0xcfe   : > { %2028 = vadd.xlane.f32.xlu0 %v2027_v28  ;;  %2145 = vmatpush1.msra.mxu1 %v2106_v37  ;;  %v2061_v28 = vld [vmem:[%s4190_s14 + $0x38] sm:$0xff]  ;;  %v2926_v37 = vld [vmem:[%s1015_s26] ss:$0 sm:$0xff]  ;;  %s4749_s14 = scalar_lea.vmem [#allocation14], %s4152_s28 }
 0xcff   : > { %2146 = vmatprep.subr.mxu1 %v2103_v39  ;;  %2239 = vmatprep.subr.mxu0 %v2061_v28  ;;  %v2927_v39 = vld [vmem:[%s4749_s14] ss:$0 sm:$0xff]  ;;  %v2350_v28 = vld [vmem:[%s4192_s23 + $0x120] sm:$0xff] }
 0xd00   : > { %2147 = vmatpush1.msra.mxu1 %v2102_v41  ;;  %2240 = vmatpush1.msra.mxu0 %v2060_v30  ;;  %v2365_v30 = vld [vmem:[%s4192_s23 + $0x198] sm:$0xff] }
 0xd01   : > { %2148 = vmatprep.subr.mxu1 %v2099_v48  ;;  %2241 = vmatprep.subr.mxu0 %v2057_v31  ;;  %v2328_v48 = vld [vmem:[%s4192_s23 + $0x70] sm:$0xff]  ;;  %v2349_v31 = vld [vmem:[%s4192_s23 + $0x118] sm:$0xff] }
 0xd02   : > { %2149 = vmatpush1.msra.mxu1 %v2098_v50  ;;  %2242 = vmatpush1.msra.mxu0 %v2056_v33  ;;  %v2343_v50 = vld [vmem:[%s4192_s23 + $0xe8] sm:$0xff]  ;;  %v2364_v33 = vld [vmem:[%s4192_s23 + $0x190] sm:$0xff] }
 0xd03   : > { %2150 = vmatprep.subr.mxu1 %v2095_v52  ;;  %v2327_v52 = vld [vmem:[%s4192_s23 + $0x68] sm:$0xff] }
 0xd04   : > { %2151 = vmatpush1.msra.mxu1 %v2094_v54  ;;  %v2342_v54 = vld [vmem:[%s4192_s23 + $0xe0] sm:$0xff] }
 0xd05   : > { %2152 = vmatprep.subr.mxu1 %v2091_v56  ;;  %v2326_v56 = vld [vmem:[%s4192_s23 + $0x60] sm:$0xff] }
 0xd06   : > { %2153 = vmatpush1.msra.mxu1 %v2090_v58  ;;  %v2341_v58 = vld [vmem:[%s4192_s23 + $0xd8] sm:$0xff] }
 0xd07   : > { %2154 = vmatprep.subr.mxu1 %v2087_v60  ;;  %v2325_v60 = vld [vmem:[%s4192_s23 + $0x58] sm:$0xff] }
 0xd08   : > { %2155 = vmatpush1.msra.mxu1 %v2086_v62  ;;  %v2340_v62 = vld [vmem:[%s4192_s23 + $0xd0] sm:$0xff] }
 0xd09   : > { %2156 = vmatprep.subr.mxu1 %v2083_v0  ;;  %v2324_v0 = vld [vmem:[%s4192_s23 + $0x50] sm:$0xff] }
 0xd0a   : > { %2157 = vmatpush1.msra.mxu1 %v2082_v3  ;;  %v2339_v3 = vld [vmem:[%s4192_s23 + $0xc8] sm:$0xff] }
 0xd0b   : > { %2158 = vmatprep.subr.mxu1 %v2079_v6  ;;  %v2323_v6 = vld [vmem:[%s4192_s23 + $0x48] sm:$0xff] }
 0xd0c   : > { %2159 = vmatpush1.msra.mxu1 %v2078_v8  ;;  %v2338_v8 = vld [vmem:[%s4192_s23 + $0xc0] sm:$0xff] }
 0xd0d   : > { %2160 = vmatprep.subr.mxu1 %v2075_v10  ;;  %v2322_v10 = vld [vmem:[%s4192_s23 + $0x40] sm:$0xff] }
 0xd0e   : > { %2161 = vmatpush1.msra.mxu1 %v2074_v13  ;;  %v2337_v13 = vld [vmem:[%s4192_s23 + $0xb8] sm:$0xff] }
 0xd0f   : > { %2162 = vmatprep.subr.mxu1 %v2071_v15  ;;  %v2321_v15 = vld [vmem:[%s4192_s23 + $0x38] sm:$0xff] }
 0xd10   : > { %2163 = vmatpush1.msra.mxu1 %v2070_v17  ;;  %v2336_v17 = vld [vmem:[%s4192_s23 + $0xb0] sm:$0xff] }
 0xd11   : > { %2164 = vmatprep.subr.mxu1 %v2067_v19  ;;  %v2320_v19 = vld [vmem:[%s4192_s23 + $0x30] sm:$0xff] }
 0xd12   : > { %2165 = vmatpush1.msra.mxu1 %v2066_v21  ;;  %v2335_v21 = vld [vmem:[%s4192_s23 + $0xa8] sm:$0xff] }
 0xd13   : > { %2166 = vmatprep.subr.mxu1 %v2063_v23  ;;  %v2319_v23 = vld [vmem:[%s4192_s23 + $0x28] sm:$0xff] }
 0xd14   : > { %2167 = vmatpush1.msra.mxu1 %v2062_v25  ;;  %v2334_v25 = vld [vmem:[%s4192_s23 + $0xa0] sm:$0xff] }
 0xd15   : > { %2168 = vmatprep.subr.mxu1 %v2059_v26  ;;  %v2318_v26 = vld [vmem:[%s4192_s23 + $0x20] sm:$0xff] }
 0xd16   : > { %2169 = vmatpush1.msra.mxu1 %v2058_v29  ;;  %v2333_v29 = vld [vmem:[%s4192_s23 + $0x98] sm:$0xff] }
 0xd17   : > { %2170 = vmatprep.subr.mxu1 %v2055_v5  ;;  %v2317_v5 = vld [vmem:[%s4192_s23 + $0x18] sm:$0xff] }
 0xd18   : > { %2171 = vmatpush1.msra.mxu1 %v2054_v32  ;;  %v2332_v32 = vld [vmem:[%s4192_s23 + $0x90] sm:$0xff] }
 0xd19   : > { %3007 = vmatprep.subr.mxu1 %v2345_v42  ;;  %v2346_v42 = vld [vmem:[%s4192_s23 + $0x100] sm:$0xff] }
 0xd87   : > { %v2029_v43 = vpop.xlane.xlu0 %2028 }
 0xd88   : > { %v2030_v44 = vmul.f32 0.0078125, %v2029_v43  ;;  %v2377_v43 = vld [vmem:[%s4192_s23 + $0x1f8] sm:$0xff] }
 0xd89   : > { %3042 = vmatprep.subr.mxu0 %v2377_v43  ;;  %v2120_v43 = vlaneseq }
 0xd8a   : > { %v4483_v45 = vsub.f32 %v4462_v27, %v2030_v44  ;;  %v2329_v44 = vld [vmem:[%s4192_s23 + $0x78] sm:$0xff] }
 0xd8c   : > { %v2032_v46 = vmul.f32 %v4483_v45, %v4483_v45 }
 0xd8e   : > { %v2033_v47 = vsel %vm1033_vm0, %v2032_v46, 0.0  ;;  %v2361_v46 = vld [vmem:[%s4192_s23 + $0x178] sm:$0xff] }
 0xd8f   : > { %2034 = vadd.xlane.f32.xlu1 %v2033_v47  ;;  %v2376_v47 = vld [vmem:[%s4192_s23 + $0x1f0] sm:$0xff] }
 0xe18   : > { %v2035_v1 = vpop.xlane.xlu1 %2034 }
 0xe19   : > { %v2036_v34 = vmul.f32 0.0078125, %v2035_v1  ;;  %v2316_v1 = vld [vmem:[%s4192_s23 + $0x10] sm:$0xff] }
 0xe1b   : > { %v2037_v35 = vadd.f32 1e-05, %v2036_v34  ;;  %v2348_v34 = vld [vmem:[%s4192_s23 + $0x110] sm:$0xff] }
 0xe1d   : > { %3370 = vrsqrt.f32 %v2037_v35  ;;  %v2331_v35 = vld [vmem:[%s4192_s23 + $0x88] sm:$0xff] }
 0xe2a   : > { %v3371_v36 = vpop.eup %3370 }
 0xe2b   : > { %v2039_v38 = vmul.f32 %v3371_v36, %v4483_v45  ;;  %v2344_v45 = vld [vmem:[%s4192_s23 + $0xf0] sm:$0xff]  ;;  %v2363_v36 = vld [vmem:[%s4192_s23 + $0x188] sm:$0xff] }
 0xe2d   : > { %v2046_v40 = vmul.f32 %v2926_v37, %v2039_v38  ;;  %v2315_v37 = vld [vmem:[%s4192_s23 + $0x8] sm:$0xff] }
 0xe2e   : > { %v2347_v38 = vld [vmem:[%s4192_s23 + $0x108] sm:$0xff] }
 0xe2f   : > { %v2053_v41 = vadd.f32 %v2927_v39, %v2046_v40  ;;  %v2330_v39 = vld [vmem:[%s4192_s23 + $0x80] sm:$0xff] }
 0xe30   : > { %v2362_v40 = vld [vmem:[%s4192_s23 + $0x180] sm:$0xff] }
 0xe31   : > { %2205 = vmatmul.mubr.f32.vlgmr.msra.gmra.mxu1 %v2053_v41  ;;  %2276 = vmatmul.mubr.f32.vlgmr.msra.gmra.mxu0 %v2053_v41  ;;  %v2314_v41 = vld [vmem:[%s4192_s23] sm:$0xff] }
 0xe32   : > { %3008 = vmatpush3.msra.mxu1 %v2329_v44  ;;  %3043 = vmatpush3.msra.mxu0 %v2361_v46  ;;  %v2121_v44 = vshrl.u32 %v2120_v43, 7 }
 0xe33   : > { %3009 = vmatprep.subr.mxu1 %v2344_v45  ;;  %3044 = vmatprep.subr.mxu0 %v2376_v47  ;;  %v2118_v47 = vld [vmem:[%s4231_s29] sm:$0xf] }
 0xe34   : > { %3010 = vmatpush3.msra.mxu1 %v2328_v48  ;;  %3045 = vmatpush3.msra.mxu0 %v2360_v49  ;;  %v2122_v46 = vsub.s32 0, %v2121_v44  ;;  %v2130_v45 = vsub.s32 2, %v2121_v44  ;;  %v2126_v48 = vsub.s32 1, %v2121_v44  ;;  %v2134_v49 = vsub.s32 3, %v2121_v44 }
 0xe35   : > { %3011 = vmatprep.subr.mxu1 %v2343_v50  ;;  %3046 = vmatprep.subr.mxu0 %v2375_v51 }
 0xe36   : > { %3012 = vmatpush3.msra.mxu1 %v2327_v52  ;;  %3047 = vmatpush3.msra.mxu0 %v2359_v53  ;;  %v2123_v50 = vrot.slane %v2118_v47, %v2122_v46  ;;  %v2131_v51 = vrot.slane %v2118_v47, %v2130_v45  ;;  %v2127_v52 = vrot.slane %v2118_v47, %v2126_v48 }
 0xe37   : > { %3013 = vmatprep.subr.mxu1 %v2342_v54  ;;  %3048 = vmatprep.subr.mxu0 %v2374_v55  ;;  %v2135_v53 = vrot.slane %v2118_v47, %v2134_v49 }
 0xe38   : > { %3014 = vmatpush3.msra.mxu1 %v2326_v56  ;;  %3049 = vmatpush3.msra.mxu0 %v2358_v57 }
 0xe39   : > { %3015 = vmatprep.subr.mxu1 %v2341_v58  ;;  %3050 = vmatprep.subr.mxu0 %v2373_v59 }
 0xe3a   : > { %3016 = vmatpush3.msra.mxu1 %v2325_v60  ;;  %3051 = vmatpush3.msra.mxu0 %v2357_v61 }
 0xe3b   : > { %3017 = vmatprep.subr.mxu1 %v2340_v62  ;;  %3052 = vmatprep.subr.mxu0 %v2372_v63 }
 0xe3c   : > { %3018 = vmatpush3.msra.mxu1 %v2324_v0  ;;  %3053 = vmatpush3.msra.mxu0 %v2356_v2 }
 0xe3d   : > { %3019 = vmatprep.subr.mxu1 %v2339_v3  ;;  %3054 = vmatprep.subr.mxu0 %v2371_v4 }
 0xe3e   : > { %3020 = vmatpush3.msra.mxu1 %v2323_v6  ;;  %3055 = vmatpush3.msra.mxu0 %v2355_v7 }
 0xe3f   : > { %3021 = vmatprep.subr.mxu1 %v2338_v8  ;;  %3056 = vmatprep.subr.mxu0 %v2370_v9 }
 0xe40   : > { %3022 = vmatpush3.msra.mxu1 %v2322_v10  ;;  %3057 = vmatpush3.msra.mxu0 %v2354_v11 }
 0xe41   : > { %3023 = vmatprep.subr.mxu1 %v2337_v13  ;;  %3058 = vmatprep.subr.mxu0 %v2369_v14 }
 0xe42   : > { %3024 = vmatpush3.msra.mxu1 %v2321_v15  ;;  %3059 = vmatpush3.msra.mxu0 %v2353_v16 }
 0xe43   : > { %3025 = vmatprep.subr.mxu1 %v2336_v17  ;;  %3060 = vmatprep.subr.mxu0 %v2368_v18 }
 0xe44   : > { %3026 = vmatpush3.msra.mxu1 %v2320_v19  ;;  %3061 = vmatpush3.msra.mxu0 %v2352_v20 }
 0xe45   : > { %3027 = vmatprep.subr.mxu1 %v2335_v21  ;;  %3062 = vmatprep.subr.mxu0 %v2367_v22 }
 0xe46   : > { %3028 = vmatpush3.msra.mxu1 %v2319_v23  ;;  %3063 = vmatpush3.msra.mxu0 %v2351_v24 }
 0xe47   : > { %3029 = vmatprep.subr.mxu1 %v2334_v25  ;;  %3064 = vmatprep.subr.mxu0 %v2366_v12 }
 0xe48   : > { %3030 = vmatpush3.msra.mxu1 %v2318_v26  ;;  %3065 = vmatpush3.msra.mxu0 %v2350_v28 }
 0xe49   : > { %3031 = vmatprep.subr.mxu1 %v2333_v29  ;;  %3066 = vmatprep.subr.mxu0 %v2365_v30 }
 0xe4a   : > { %3032 = vmatpush3.msra.mxu1 %v2317_v5  ;;  %3067 = vmatpush3.msra.mxu0 %v2349_v31  ;;  %v2932_v31 = vld [vmem:[%s882_s0] ss:$0 sm:$0xff] }
 0xe4b   : > { %3033 = vmatprep.subr.mxu1 %v2332_v32  ;;  %3068 = vmatprep.subr.mxu0 %v2364_v33 }
 0xe4c   : > { %3034 = vmatpush3.msra.mxu1 %v2316_v1  ;;  %3069 = vmatpush3.msra.mxu0 %v2348_v34 }
 0xe4d   : > { %3035 = vmatprep.subr.mxu1 %v2331_v35  ;;  %3070 = vmatprep.subr.mxu0 %v2363_v36 }
 0xe4e   : > { %3036 = vmatpush3.msra.mxu1 %v2315_v37  ;;  %3071 = vmatpush3.msra.mxu0 %v2347_v38 }
 0xe4f   : > { %3037 = vmatprep.subr.mxu1 %v2330_v39  ;;  %3072 = vmatprep.subr.mxu0 %v2362_v40 }
 0xe50   : > { %3038 = vmatpush3.msra.mxu1 %v2314_v41  ;;  %3073 = vmatpush3.msra.mxu0 %v2346_v42 }
 0xef1   : > { %v2206_v54 = vpop.f32.mrf.mxu1  ;;  %v2277_v55 = vpop.f32.mrf.mxu0 }
 0xef2   : > { %v2207_v56 = vadd.f32 %v2206_v54, %v2123_v50  ;;  %v2278_v57 = vadd.f32 %v2277_v55, %v2131_v51 }
 0xef3   : > { %v2208_v58 = vpop.f32.mrf.mxu1  ;;  %v2279_v59 = vpop.f32.mrf.mxu0 }
 0xef4   : > { %v2928_v60 = vmul.f32 -1.702, %v2207_v56  ;;  %v2930_v61 = vmul.f32 -1.702, %v2278_v57  ;;  %v2209_v62 = vadd.f32 %v2208_v58, %v2127_v52  ;;  %v2280_v63 = vadd.f32 %v2279_v59, %v2135_v53 }
 0xef6   : > { %v2290_v0 = vmul.f32 1.442695, %v2928_v60  ;;  %v2294_v2 = vmul.f32 1.442695, %v2930_v61  ;;  %v2929_v3 = vmul.f32 -1.702, %v2209_v62 }
 0xef7   : > { %v2931_v4 = vmul.f32 -1.702, %v2280_v63 }
 0xef8   : > { %3372 = vpow2.f32 %v2290_v0  ;;  %v2292_v6 = vmul.f32 1.442695, %v2929_v3 }
 0xef9   : > { %3374 = vpow2.f32 %v2294_v2  ;;  %v2296_v7 = vmul.f32 1.442695, %v2931_v4 }
 0xefa   : > { %3376 = vpow2.f32 %v2292_v6 }
 0xefb   : > { %3378 = vpow2.f32 %v2296_v7 }
 0xf05   : > { %v3373_v8 = vpop.eup %3372 }
 0xf06   : > { %v3375_v9 = vpop.eup %3374  ;;  %v2298_v10 = vadd.f32 1.0, %v3373_v8 }
 0xf07   : > { %v3377_v11 = vpop.eup %3376  ;;  %v2300_v13 = vadd.f32 1.0, %v3375_v9 }
 0xf08   : > { %v3379_v14 = vpop.eup %3378  ;;  %3380 = vrcp.f32 %v2298_v10  ;;  %v2299_v15 = vadd.f32 1.0, %v3377_v11 }
 0xf09   : > { %3382 = vrcp.f32 %v2300_v13  ;;  %v2301_v16 = vadd.f32 1.0, %v3379_v14 }
 0xf0a   : > { %3384 = vrcp.f32 %v2299_v15 }
 0xf0b   : > { %3386 = vrcp.f32 %v2301_v16 }
 0xf15   : > { %v3381_v17 = vpop.eup %3380 }
 0xf16   : > { %v3383_v18 = vpop.eup %3382  ;;  %v2310_v22 = vmul.f32 %v3381_v17, %v2207_v56 }
 0xf17   : > { %v3385_v19 = vpop.eup %3384  ;;  %v2312_v24 = vmul.f32 %v3383_v18, %v2278_v57 }
 0xf18   : > { %v3387_v20 = vpop.eup %3386  ;;  %v2311_v21 = vmul.f32 %v3385_v19, %v2209_v62 }
 0xf19   : > { %v2313_v23 = vmul.f32 %v3387_v20, %v2280_v63 }
 0xf1a   : > { %2442 = vmatprep.mubr.f32.mxu1 %v2311_v21 }
 0xf1b   : > { %2512 = vmatprep.mubr.f32.mxu0 %v2313_v23  ;;  %2443 = vmatmul.mubr.f32.vlgmr.msra.gmra.mxu1 %v2310_v22 }
 0xf1c   : > { %2513 = vmatmul.mubr.f32.vlgmr.msra.gmra.mxu0 %v2312_v24 }
 0xfdb   : > { %v3039_v25 = vpop.f32.mrf.mxu1 }
 0xfdc   : > { %v3074_v12 = vpop.f32.mrf.mxu0 }
 0xfdd   : > { %v3040_v26 = vpop.f32.mrf.mxu1 }
 0xfde   : > { %v3041_v28 = vadd.f32 %v3040_v26, %v3039_v25  ;;  %v3075_v29 = vpop.f32.mrf.mxu0 }
 0xfdf   : > { %v3076_v30 = vadd.f32 %v3075_v29, %v3074_v12 }
 0xfe1   : > { %v2515_v5 = vadd.f32 %v3076_v30, %v3041_v28 }
 0xfe3   : > { %v2518_v32 = vadd.f32 %v2515_v5, %v4462_v27 }
 0xfe5   : > { %v2526_v33 = vadd.f32 %v2932_v31, %v2518_v32 }
 0xfe7   : > { %2527 = vst [vmem:[#allocation2] sm:$0xf] %v2526_v33  ;;  %2528 = vst [vmem:[%s1023_s9] sm:$0xf] %v2526_v33 }
 0xfe8 PF: > { %s4751_s11 = sld [smem:[#allocation32_spill]] }
 0xfe9   : > { %s4752_s24 = sld [smem:[#allocation26_spill]] }
 0xfea   : > { %s4753_s25 = sld [smem:[#allocation27_spill]] }
 0xfeb   : > { %s4754_s26 = sld [smem:[#allocation35_spill]] }
 0xfec   : > { %s4755_s27 = sld [smem:[#allocation30_spill]] }
 0xfed   : > { %s4756_s28 = sld [smem:[#allocation31_spill]] }
 0xfee   : > { %s45_s30 = sadd.s32 1, %s4751_s11   ;;  %s4757_s29 = sld [smem:[#allocation33_spill]] }
 0xfef   : > { %p42_p7 = scmp.ge.s32.totalorder %s45_s30, 6   ;;  %s4758_s0 = sld [smem:[#allocation34_spill]] }
 0xff1   :  { %44 = sbr.rel (!%p42_p7) target bundleno = 34 (0x22), region = 270 }
 0xff6   :  { %2548 = vsyncpa [#allocation4], 1 }
 0xff7   :  { %2550 = vsyncpa [#allocation4 + $0x1], 1 }
 0xff8   :  { %2551 = vsyncpa [#allocation6], 1 }
 0xff9   :  { %2553 = vsyncpa [#allocation6 + $0x1], 1 }
 0xffa   :  { %2554 = vsyncpa [#allocation9], 1 }
 0xffb   :  { %2556 = vsyncpa [#allocation9 + $0x1], 1 }
 0xffc   :  { %2557 = vsyncpa [#allocation12], 1 }
 0xffd   :  { %2559 = vsyncpa [#allocation12 + $0x1], 1 }
 0xffe   :  { %2560 = vsyncpa [#allocation15], 1 }
 0xfff   :  { %2562 = vsyncpa [#allocation15 + $0x1], 1 }
0x1000   :  { %2563 = vsyncpa [#allocation18], 1 }
0x1001   :  { %2565 = vsyncpa [#allocation18 + $0x1], 1 }

</bundles_post_ra>
